<compile_context>
chip_gen: v6e
topology: v6e:2x2x1
jax: 0.10.0
libtpu: 0.0.40
codegen_flags: <defaults>
</compile_context>

<pallas_src>
import functools

import jax
import jax.numpy as jnp
from jax.experimental import pallas as pl
from jax.experimental.pallas import tpu as pltpu

# ---------------- small config (consistent with MambaConfig fields) ----------
VOCAB = 64
D_MODEL = 32
N_LAYERS = 2
DT_RANK = 8
D_STATE = 16
EXPAND = 2
D_CONV = 4
HIDDEN = D_MODEL * EXPAND
BATCH = 2
SEQ = 8
LN_EPS = 1e-5


# ---------------- in-kernel helpers ------------------------------------------
def _ln(x, g, b):
    mean = jnp.mean(x, axis=-1, keepdims=True)
    var = jnp.mean(jnp.square(x - mean), axis=-1, keepdims=True)
    return (x - mean) * jax.lax.rsqrt(var + LN_EPS) * g + b


def _silu(x):
    return x * jax.nn.sigmoid(x)


# ---------------- fused Mamba block kernel -----------------------------------
def _mamba_block_kernel(x_ref,
                        ln1_g_ref, ln1_b_ref,
                        conv_w_ref, conv_b_ref,
                        xpdt_w_ref, xpb_w_ref, xpc_w_ref,
                        dtp_w_ref, dtp_b_ref,
                        a_log_t_ref,
                        outp_w_ref,
                        ln2_g_ref, ln2_b_ref,
                        gate_w_ref, up_w_ref, down_w_ref,
                        o_ref,
                        y_scr,
                        *, seq_len):
    BL, D = x_ref.shape                    # tokens (B*L) on sublanes, D on lanes
    L = seq_len
    B = BL // L
    K = conv_w_ref.shape[0]
    N = a_log_t_ref.shape[0]

    x = x_ref[...]                                           # residual stream

    # ---- LayerNorm 1 ---------------------------------------------------------
    h = _ln(x, ln1_g_ref[...], ln1_b_ref[...])

    # ---- depthwise causal conv1d + SiLU (all batches at once) ----------------
    # out[t, d] = bias[d] + sum_k w[k, d] * h[t - (K-1-k), d], masked so taps
    # never cross a batch boundary (pos-in-sequence < shift => zero).
    w = conv_w_ref[...]
    hpad = jnp.concatenate([jnp.zeros((K - 1, D), jnp.float32), h], axis=0)
    pos = jax.lax.broadcasted_iota(jnp.int32, (BL, 1), 0) % L
    acc = jnp.zeros((BL, D), jnp.float32) + conv_b_ref[...]
    for k in range(K):
        s = K - 1 - k                                        # causal shift
        tap = hpad[k:k + BL, :] * w[k:k + 1, :]
        if s > 0:
            tap = jnp.where(pos >= s, tap, 0.0)
        acc = acc + tap
    u = _silu(acc)                                           # (BL, D)

    # ---- x_proj (split into dt/B/C weights) + dt_proj + softplus -------------
    dt_low = jnp.dot(u, xpdt_w_ref[...], preferred_element_type=jnp.float32)  # (BL, R)
    Bx = jnp.dot(u, xpb_w_ref[...], preferred_element_type=jnp.float32)       # (BL, N)
    Cx = jnp.dot(u, xpc_w_ref[...], preferred_element_type=jnp.float32)       # (BL, N)
    dt = jnp.dot(dt_low, dtp_w_ref[...],
                 preferred_element_type=jnp.float32) + dtp_b_ref[...]
    dt = jnp.logaddexp(dt, 0.0)                              # softplus, (BL, D)

    # ---- selective scan -------------------------------------------------------
    A_t = -jnp.exp(a_log_t_ref[...])                         # (N, D)
    dtu = dt * u                                             # (BL, D)
    BxT = Bx.T                                               # (N, BL), one transpose
    CxT = Cx.T                                               # (N, BL)
    for b in range(B):                                       # B = 2, static
        state = jnp.zeros((N, D), jnp.float32)
        for i in range(L):                                   # L = 8, unrolled
            t = b * L + i
            dA = jnp.exp(dt[t:t + 1, :] * A_t)               # (N, D)
            dBu = BxT[:, t:t + 1] * dtu[t:t + 1, :]          # (N, D)
            state = dA * state + dBu
            # direct per-step row store (no list + concatenate epilogue)
            y_scr[pl.ds(t, 1), :] = jnp.sum(CxT[:, t:t + 1] * state,
                                            axis=0, keepdims=True)

    y = jnp.dot(y_scr[...], outp_w_ref[...], preferred_element_type=jnp.float32)

    # ---- residual + LN2 + gated MLP + residual --------------------------------
    x1 = x + y                                               # dropout = identity
    h2 = _ln(x1, ln2_g_ref[...], ln2_b_ref[...])
    g = _silu(jnp.dot(h2, gate_w_ref[...], preferred_element_type=jnp.float32))
    up = jnp.dot(h2, up_w_ref[...], preferred_element_type=jnp.float32)
    mlp = jnp.dot(g * up, down_w_ref[...], preferred_element_type=jnp.float32)
    o_ref[...] = x1 + mlp                                    # dropout = identity


def pallas_mamba_block(x2d, lp, *, seq_len):
    BL, D = x2d.shape
    kernel = functools.partial(_mamba_block_kernel, seq_len=seq_len)
    return pl.pallas_call(
        kernel,
        out_shape=jax.ShapeDtypeStruct((BL, D), jnp.float32),
        scratch_shapes=[pltpu.VMEM((BL, D), jnp.float32)],
    )(x2d,
      lp["norm1_g"], lp["norm1_b"],
      lp["conv_w"], lp["conv_b"],
      lp["xproj_dt_w"], lp["xproj_B_w"], lp["xproj_C_w"],
      lp["dt_proj_w"], lp["dt_proj_b"],
      lp["A_log_t"],
      lp["out_proj_w"],
      lp["norm2_g"], lp["norm2_b"],
      lp["gate_w"], lp["up_w"], lp["down_w"])


# ---------------- fused final LayerNorm + tied lm_head ------------------------
def _final_head_kernel(x_ref, g_ref, b_ref, w_ref, o_ref):
    h = _ln(x_ref[...], g_ref[...], b_ref[...])
    o_ref[...] = jnp.dot(h, w_ref[...], preferred_element_type=jnp.float32)


def pallas_final_head(x2d, gamma, beta, w_t):
    BL, _ = x2d.shape
    V = w_t.shape[1]
    return pl.pallas_call(
        _final_head_kernel,
        out_shape=jax.ShapeDtypeStruct((BL, V), jnp.float32),
    )(x2d, gamma, beta, w_t)


# ---------------- parameters (deterministic, synthetic) ----------------------
def init_params(key):
    def normal(k, shape):
        return 0.02 * jax.random.normal(k, shape, jnp.float32)

    keys = iter(jax.random.split(key, 10 * N_LAYERS + 2))
    emb = normal(next(keys), (VOCAB, D_MODEL))
    # lm_head weight is tied to the embedding; store the transposed copy once
    # at init so no per-call XLA transpose is needed.
    params = {"embedding": emb, "lm_head_w": jnp.transpose(emb)}
    conv_bound = 1.0 / (D_CONV ** 0.5)
    layers = []
    for _ in range(N_LAYERS):
        lp = {
            "norm1_g": jnp.ones((1, D_MODEL), jnp.float32),
            "norm1_b": jnp.zeros((1, D_MODEL), jnp.float32),
            "conv_w": jax.random.uniform(next(keys), (D_CONV, D_MODEL), jnp.float32,
                                         -conv_bound, conv_bound),
            "conv_b": jax.random.uniform(next(keys), (1, D_MODEL), jnp.float32,
                                         -conv_bound, conv_bound),
            # x_proj weight pre-split into dt / B / C pieces (no lane-sliced 40-wide
            # intermediate anywhere).
            "xproj_dt_w": normal(next(keys), (D_MODEL, DT_RANK)),
            "xproj_B_w": normal(next(keys), (D_MODEL, D_STATE)),
            "xproj_C_w": normal(next(keys), (D_MODEL, D_STATE)),
            "dt_proj_w": normal(next(keys), (DT_RANK, D_MODEL)),
            "dt_proj_b": jnp.zeros((1, D_MODEL), jnp.float32),
            # A = arange(1..N) per channel (as in SelectiveSSM.__init__), stored
            # transposed (N, D) to match the scan's (N, D) state layout.
            "A_log_t": jnp.log(jnp.tile(
                jnp.arange(1, D_STATE + 1, dtype=jnp.float32)[:, None],
                (1, D_MODEL))),
            "out_proj_w": normal(next(keys), (D_MODEL, D_MODEL)),
            "norm2_g": jnp.ones((1, D_MODEL), jnp.float32),
            "norm2_b": jnp.zeros((1, D_MODEL), jnp.float32),
            "gate_w": normal(next(keys), (D_MODEL, HIDDEN)),
            "up_w": normal(next(keys), (D_MODEL, HIDDEN)),
            "down_w": normal(next(keys), (HIDDEN, D_MODEL)),
        }
        layers.append(lp)
    params["layers"] = layers
    params["norm_f_g"] = jnp.ones((1, D_MODEL), jnp.float32)
    params["norm_f_b"] = jnp.zeros((1, D_MODEL), jnp.float32)
    return params


# ---------------- forward ------------------------------------------------------
def bhasa_mamba_forward(params, input_ids):
    B, L = input_ids.shape
    x = jnp.take(params["embedding"], input_ids, axis=0)      # (B, L, D)
    x = x.reshape(B * L, D_MODEL)                             # token-major slab
    for lp in params["layers"]:
        x = pallas_mamba_block(x, lp, seq_len=L)              # one kernel / block
    logits = pallas_final_head(x, params["norm_f_g"], params["norm_f_b"],
                               params["lm_head_w"])           # norm_f + tied head
    return logits.reshape(B, L, VOCAB)


# TODO(synk): generate() (top-k multinomial sampling loop) not implemented;
# only the forward pass (logits) is reproduced.

if __name__ == "__main__":
    key = jax.random.PRNGKey(0)
    pkey, ikey = jax.random.split(key)
    params = init_params(pkey)
    input_ids = jax.random.randint(ikey, (BATCH, SEQ), 0, VOCAB)
    logits = jax.jit(bhasa_mamba_forward)(params, input_ids)
    logits = jax.block_until_ready(logits)
    assert logits.shape == (BATCH, SEQ, VOCAB)
    assert bool(jnp.all(jnp.isfinite(logits)))
    print("KERNEL_OK")
</pallas_src>

<mosaic_0001>
module attributes {stable_mosaic.version = 11 : i64} {
  func.func @_final_head_kernel(%arg0: memref<16x32xf32, #tpu.memory_space<vmem>>, %arg1: memref<1x32xf32, #tpu.memory_space<vmem>>, %arg2: memref<1x32xf32, #tpu.memory_space<vmem>>, %arg3: memref<32x64xf32, #tpu.memory_space<vmem>>, %arg4: memref<16x64xf32, #tpu.memory_space<vmem>>) attributes {dimension_semantics = [], scalar_prefetch = 0 : i64, scratch_operands = 0 : i64, tpu.core_type = #tpu.core_type<tc>} {
    %c0 = arith.constant 0 : index
    %c0_0 = arith.constant 0 : index
    %0 = vector.load %arg0[%c0, %c0_0] : memref<16x32xf32, #tpu.memory_space<vmem>>, vector<16x32xf32>
    %c0_1 = arith.constant 0 : index
    %c0_2 = arith.constant 0 : index
    %1 = vector.load %arg1[%c0_1, %c0_2] : memref<1x32xf32, #tpu.memory_space<vmem>>, vector<1x32xf32>
    %c0_3 = arith.constant 0 : index
    %c0_4 = arith.constant 0 : index
    %2 = vector.load %arg2[%c0_3, %c0_4] : memref<1x32xf32, #tpu.memory_space<vmem>>, vector<1x32xf32>
    %cst = arith.constant dense<0.000000e+00> : vector<16xf32>
    %3 = vector.multi_reduction <add>, %0, %cst [1] : vector<16x32xf32> to vector<16xf32>
    %4 = vector.shape_cast %3 : vector<16xf32> to vector<16x1xf32>
    %cst_5 = arith.constant 3.200000e+01 : f32
    %5 = vector.broadcast %cst_5 : f32 to vector<16x1xf32>
    %6 = arith.divf %4, %5 : vector<16x1xf32>
    %7 = vector.broadcast %6 : vector<16x1xf32> to vector<16x32xf32>
    %8 = arith.subf %0, %7 : vector<16x32xf32>
    %9 = arith.mulf %8, %8 : vector<16x32xf32>
    %cst_6 = arith.constant dense<0.000000e+00> : vector<16xf32>
    %10 = vector.multi_reduction <add>, %9, %cst_6 [1] : vector<16x32xf32> to vector<16xf32>
    %11 = vector.shape_cast %10 : vector<16xf32> to vector<16x1xf32>
    %cst_7 = arith.constant 3.200000e+01 : f32
    %12 = vector.broadcast %cst_7 : f32 to vector<16x1xf32>
    %13 = arith.divf %11, %12 : vector<16x1xf32>
    %14 = vector.broadcast %6 : vector<16x1xf32> to vector<16x32xf32>
    %15 = arith.subf %0, %14 : vector<16x32xf32>
    %cst_8 = arith.constant 9.99999974E-6 : f32
    %16 = vector.broadcast %cst_8 : f32 to vector<16x1xf32>
    %17 = arith.addf %13, %16 : vector<16x1xf32>
    %18 = math.rsqrt %17 : vector<16x1xf32>
    %19 = vector.broadcast %18 : vector<16x1xf32> to vector<16x32xf32>
    %20 = arith.mulf %15, %19 : vector<16x32xf32>
    %21 = vector.broadcast %1 : vector<1x32xf32> to vector<16x32xf32>
    %22 = arith.mulf %20, %21 : vector<16x32xf32>
    %23 = vector.broadcast %2 : vector<1x32xf32> to vector<16x32xf32>
    %24 = arith.addf %22, %23 : vector<16x32xf32>
    %c0_9 = arith.constant 0 : index
    %c0_10 = arith.constant 0 : index
    %25 = vector.load %arg3[%c0_9, %c0_10] : memref<32x64xf32, #tpu.memory_space<vmem>>, vector<32x64xf32>
    %cst_11 = arith.constant dense<0.000000e+00> : vector<16x64xf32>
    %26 = tpu.matmul %24, %25, %cst_11 {dimension_numbers = #tpu.dot_dimension_numbers<[1], [0], [0], [1], [0, 0, 1, 1], [], []>} : vector<16x32xf32>, vector<32x64xf32>, vector<16x64xf32> -> vector<16x64xf32>
    %c0_12 = arith.constant 0 : index
    %c0_13 = arith.constant 0 : index
    %27 = vector.load %arg4[%c0_12, %c0_13] : memref<16x64xf32, #tpu.memory_space<vmem>>, vector<16x64xf32>
    tpu.vector_store %arg4[%c0_12, %c0_13], %26 {strides = array<i32>} : memref<16x64xf32, #tpu.memory_space<vmem>>, vector<16x64xf32>,
    return
  }
}

module attributes {stable_mosaic.version = 11 : i64} {
  func.func @_mamba_block_kernel(%arg0: memref<16x32xf32, #tpu.memory_space<vmem>>, %arg1: memref<1x32xf32, #tpu.memory_space<vmem>>, %arg2: memref<1x32xf32, #tpu.memory_space<vmem>>, %arg3: memref<4x32xf32, #tpu.memory_space<vmem>>, %arg4: memref<1x32xf32, #tpu.memory_space<vmem>>, %arg5: memref<32x8xf32, #tpu.memory_space<vmem>>, %arg6: memref<32x16xf32, #tpu.memory_space<vmem>>, %arg7: memref<32x16xf32, #tpu.memory_space<vmem>>, %arg8: memref<8x32xf32, #tpu.memory_space<vmem>>, %arg9: memref<1x32xf32, #tpu.memory_space<vmem>>, %arg10: memref<16x32xf32, #tpu.memory_space<vmem>>, %arg11: memref<32x32xf32, #tpu.memory_space<vmem>>, %arg12: memref<1x32xf32, #tpu.memory_space<vmem>>, %arg13: memref<1x32xf32, #tpu.memory_space<vmem>>, %arg14: memref<32x64xf32, #tpu.memory_space<vmem>>, %arg15: memref<32x64xf32, #tpu.memory_space<vmem>>, %arg16: memref<64x32xf32, #tpu.memory_space<vmem>>, %arg17: memref<16x32xf32, #tpu.memory_space<vmem>>, %arg18: memref<16x32xf32, #tpu.memory_space<vmem>>) attributes {dimension_semantics = [], scalar_prefetch = 0 : i64, scratch_operands = 1 : i64, tpu.core_type = #tpu.core_type<tc>} {
    %c0 = arith.constant 0 : index
    %c0_0 = arith.constant 0 : index
    %0 = vector.load %arg0[%c0, %c0_0] : memref<16x32xf32, #tpu.memory_space<vmem>>, vector<16x32xf32>
    %c0_1 = arith.constant 0 : index
    %c0_2 = arith.constant 0 : index
    %1 = vector.load %arg1[%c0_1, %c0_2] : memref<1x32xf32, #tpu.memory_space<vmem>>, vector<1x32xf32>
    %c0_3 = arith.constant 0 : index
    %c0_4 = arith.constant 0 : index
    %2 = vector.load %arg2[%c0_3, %c0_4] : memref<1x32xf32, #tpu.memory_space<vmem>>, vector<1x32xf32>
    %cst = arith.constant dense<0.000000e+00> : vector<16xf32>
    %3 = vector.multi_reduction <add>, %0, %cst [1] : vector<16x32xf32> to vector<16xf32>
    %4 = vector.shape_cast %3 : vector<16xf32> to vector<16x1xf32>
    %cst_5 = arith.constant 3.200000e+01 : f32
    %5 = vector.broadcast %cst_5 : f32 to vector<16x1xf32>
    %6 = arith.divf %4, %5 : vector<16x1xf32>
    %7 = vector.broadcast %6 : vector<16x1xf32> to vector<16x32xf32>
    %8 = arith.subf %0, %7 : vector<16x32xf32>
    %9 = arith.mulf %8, %8 : vector<16x32xf32>
    %cst_6 = arith.constant dense<0.000000e+00> : vector<16xf32>
    %10 = vector.multi_reduction <add>, %9, %cst_6 [1] : vector<16x32xf32> to vector<16xf32>
    %11 = vector.shape_cast %10 : vector<16xf32> to vector<16x1xf32>
    %cst_7 = arith.constant 3.200000e+01 : f32
    %12 = vector.broadcast %cst_7 : f32 to vector<16x1xf32>
    %13 = arith.divf %11, %12 : vector<16x1xf32>
    %14 = vector.broadcast %6 : vector<16x1xf32> to vector<16x32xf32>
    %15 = arith.subf %0, %14 : vector<16x32xf32>
    %cst_8 = arith.constant 9.99999974E-6 : f32
    %16 = vector.broadcast %cst_8 : f32 to vector<16x1xf32>
    %17 = arith.addf %13, %16 : vector<16x1xf32>
    %18 = math.rsqrt %17 : vector<16x1xf32>
    %19 = vector.broadcast %18 : vector<16x1xf32> to vector<16x32xf32>
    %20 = arith.mulf %15, %19 : vector<16x32xf32>
    %21 = vector.broadcast %1 : vector<1x32xf32> to vector<16x32xf32>
    %22 = arith.mulf %20, %21 : vector<16x32xf32>
    %23 = vector.broadcast %2 : vector<1x32xf32> to vector<16x32xf32>
    %24 = arith.addf %22, %23 : vector<16x32xf32>
    %c0_9 = arith.constant 0 : index
    %c0_10 = arith.constant 0 : index
    %25 = vector.load %arg3[%c0_9, %c0_10] : memref<4x32xf32, #tpu.memory_space<vmem>>, vector<4x32xf32>
    %cst_11 = arith.constant 0.000000e+00 : f32
    %26 = vector.broadcast %cst_11 : f32 to vector<3x32xf32>
    %27 = tpu.concatenate %26, %24 in 0 : vector<3x32xf32>, vector<16x32xf32> -> vector<19x32xf32>
    %28 = tpu.iota {dimensions = array<i32: 0>} : vector<16x1xi32>
    %c8_i32 = arith.constant 8 : i32
    %c0_i32 = arith.constant 0 : i32
    %29 = arith.cmpi eq, %c8_i32, %c0_i32 : i32
    %c1_i32 = arith.constant 1 : i32
    %30 = arith.select %29, %c1_i32, %c8_i32 : i32
    %31 = vector.broadcast %30 : i32 to vector<16x1xi32>
    %32 = arith.remsi %28, %31 : vector<16x1xi32>
    %c0_i32_12 = arith.constant 0 : i32
    %33 = vector.broadcast %c0_i32_12 : i32 to vector<16x1xi32>
    %34 = arith.cmpi ne, %32, %33 : vector<16x1xi32>
    %c0_i32_13 = arith.constant 0 : i32
    %35 = vector.broadcast %c0_i32_13 : i32 to vector<16x1xi32>
    %36 = arith.cmpi slt, %32, %35 : vector<16x1xi32>
    %c0_i32_14 = arith.constant 0 : i32
    %37 = arith.cmpi slt, %30, %c0_i32_14 : i32
    %38 = vector.broadcast %37 : i1 to vector<16x1xi1>
    %39 = vector.broadcast %38 : vector<16x1xi1> to vector<16x1xi1>
    %40 = arith.xori %36, %39 : vector<16x1xi1>
    %41 = arith.andi %40, %34 : vector<16x1xi1>
    %42 = vector.broadcast %30 : i32 to vector<16x1xi32>
    %43 = arith.addi %32, %42 : vector<16x1xi32>
    %44 = arith.select %41, %43, %32 : vector<16x1xi1>, vector<16x1xi32>
    %cst_15 = arith.constant 0.000000e+00 : f32
    %45 = vector.broadcast %cst_15 : f32 to vector<16x32xf32>
    %c0_16 = arith.constant 0 : index
    %c0_17 = arith.constant 0 : index
    %46 = vector.load %arg4[%c0_16, %c0_17] : memref<1x32xf32, #tpu.memory_space<vmem>>, vector<1x32xf32>
    %47 = vector.broadcast %46 : vector<1x32xf32> to vector<16x32xf32>
    %48 = arith.addf %45, %47 : vector<16x32xf32>
    %49 = vector.extract_strided_slice %27 {offsets = [0, 0], sizes = [16, 32], strides = [1, 1]} : vector<19x32xf32> to vector<16x32xf32>
    %50 = vector.extract_strided_slice %25 {offsets = [0, 0], sizes = [1, 32], strides = [1, 1]} : vector<4x32xf32> to vector<1x32xf32>
    %51 = vector.broadcast %50 : vector<1x32xf32> to vector<16x32xf32>
    %52 = arith.mulf %49, %51 : vector<16x32xf32>
    %c3_i32 = arith.constant 3 : i32
    %53 = vector.broadcast %c3_i32 : i32 to vector<16x1xi32>
    %54 = arith.cmpi sge, %44, %53 : vector<16x1xi32>
    %cst_18 = arith.constant 0.000000e+00 : f32
    %55 = vector.shape_cast %54 : vector<16x1xi1> to vector<16x1xi1>
    %56 = vector.broadcast %55 : vector<16x1xi1> to vector<16x32xi1>
    %57 = vector.broadcast %cst_18 : f32 to vector<16x32xf32>
    %58 = arith.select %56, %52, %57 : vector<16x32xi1>, vector<16x32xf32>
    %59 = arith.addf %48, %58 : vector<16x32xf32>
    %60 = vector.extract_strided_slice %27 {offsets = [1, 0], sizes = [16, 32], strides = [1, 1]} : vector<19x32xf32> to vector<16x32xf32>
    %61 = vector.extract_strided_slice %25 {offsets = [1, 0], sizes = [1, 32], strides = [1, 1]} : vector<4x32xf32> to vector<1x32xf32>
    %62 = vector.broadcast %61 : vector<1x32xf32> to vector<16x32xf32>
    %63 = arith.mulf %60, %62 : vector<16x32xf32>
    %c2_i32 = arith.constant 2 : i32
    %64 = vector.broadcast %c2_i32 : i32 to vector<16x1xi32>
    %65 = arith.cmpi sge, %44, %64 : vector<16x1xi32>
    %cst_19 = arith.constant 0.000000e+00 : f32
    %66 = vector.shape_cast %65 : vector<16x1xi1> to vector<16x1xi1>
    %67 = vector.broadcast %66 : vector<16x1xi1> to vector<16x32xi1>
    %68 = vector.broadcast %cst_19 : f32 to vector<16x32xf32>
    %69 = arith.select %67, %63, %68 : vector<16x32xi1>, vector<16x32xf32>
    %70 = arith.addf %59, %69 : vector<16x32xf32>
    %71 = vector.extract_strided_slice %27 {offsets = [2, 0], sizes = [16, 32], strides = [1, 1]} : vector<19x32xf32> to vector<16x32xf32>
    %72 = vector.extract_strided_slice %25 {offsets = [2, 0], sizes = [1, 32], strides = [1, 1]} : vector<4x32xf32> to vector<1x32xf32>
    %73 = vector.broadcast %72 : vector<1x32xf32> to vector<16x32xf32>
    %74 = arith.mulf %71, %73 : vector<16x32xf32>
    %c1_i32_20 = arith.constant 1 : i32
    %75 = vector.broadcast %c1_i32_20 : i32 to vector<16x1xi32>
    %76 = arith.cmpi sge, %44, %75 : vector<16x1xi32>
    %cst_21 = arith.constant 0.000000e+00 : f32
    %77 = vector.shape_cast %76 : vector<16x1xi1> to vector<16x1xi1>
    %78 = vector.broadcast %77 : vector<16x1xi1> to vector<16x32xi1>
    %79 = vector.broadcast %cst_21 : f32 to vector<16x32xf32>
    %80 = arith.select %78, %74, %79 : vector<16x32xi1>, vector<16x32xf32>
    %81 = arith.addf %70, %80 : vector<16x32xf32>
    %82 = vector.extract_strided_slice %27 {offsets = [3, 0], sizes = [16, 32], strides = [1, 1]} : vector<19x32xf32> to vector<16x32xf32>
    %83 = vector.extract_strided_slice %25 {offsets = [3, 0], sizes = [1, 32], strides = [1, 1]} : vector<4x32xf32> to vector<1x32xf32>
    %84 = vector.broadcast %83 : vector<1x32xf32> to vector<16x32xf32>
    %85 = arith.mulf %82, %84 : vector<16x32xf32>
    %86 = arith.addf %81, %85 : vector<16x32xf32>
    %87 = arith.negf %86 : vector<16x32xf32>
    %88 = math.exp %87 : vector<16x32xf32>
    %cst_22 = arith.constant 1.000000e+00 : f32
    %89 = vector.broadcast %cst_22 : f32 to vector<16x32xf32>
    %90 = arith.addf %89, %88 : vector<16x32xf32>
    %91 = arith.divf %89, %90 : vector<16x32xf32>
    %92 = arith.mulf %86, %91 : vector<16x32xf32>
    %c0_23 = arith.constant 0 : index
    %c0_24 = arith.constant 0 : index
    %93 = vector.load %arg5[%c0_23, %c0_24] : memref<32x8xf32, #tpu.memory_space<vmem>>, vector<32x8xf32>
    %cst_25 = arith.constant dense<0.000000e+00> : vector<16x8xf32>
    %94 = tpu.matmul %92, %93, %cst_25 {dimension_numbers = #tpu.dot_dimension_numbers<[1], [0], [0], [1], [0, 0, 1, 1], [], []>} : vector<16x32xf32>, vector<32x8xf32>, vector<16x8xf32> -> vector<16x8xf32>
    %c0_26 = arith.constant 0 : index
    %c0_27 = arith.constant 0 : index
    %95 = vector.load %arg6[%c0_26, %c0_27] : memref<32x16xf32, #tpu.memory_space<vmem>>, vector<32x16xf32>
    %cst_28 = arith.constant dense<0.000000e+00> : vector<16x16xf32>
    %96 = tpu.matmul %92, %95, %cst_28 {dimension_numbers = #tpu.dot_dimension_numbers<[1], [0], [0], [1], [0, 0, 1, 1], [], []>} : vector<16x32xf32>, vector<32x16xf32>, vector<16x16xf32> -> vector<16x16xf32>
    %c0_29 = arith.constant 0 : index
    %c0_30 = arith.constant 0 : index
    %97 = vector.load %arg7[%c0_29, %c0_30] : memref<32x16xf32, #tpu.memory_space<vmem>>, vector<32x16xf32>
    %cst_31 = arith.constant dense<0.000000e+00> : vector<16x16xf32>
    %98 = tpu.matmul %92, %97, %cst_31 {dimension_numbers = #tpu.dot_dimension_numbers<[1], [0], [0], [1], [0, 0, 1, 1], [], []>} : vector<16x32xf32>, vector<32x16xf32>, vector<16x16xf32> -> vector<16x16xf32>
    %c0_32 = arith.constant 0 : index
    %c0_33 = arith.constant 0 : index
    %99 = vector.load %arg8[%c0_32, %c0_33] : memref<8x32xf32, #tpu.memory_space<vmem>>, vector<8x32xf32>
    %cst_34 = arith.constant dense<0.000000e+00> : vector<16x32xf32>
    %100 = tpu.matmul %94, %99, %cst_34 {dimension_numbers = #tpu.dot_dimension_numbers<[1], [0], [0], [1], [0, 0, 1, 1], [], []>} : vector<16x8xf32>, vector<8x32xf32>, vector<16x32xf32> -> vector<16x32xf32>
    %c0_35 = arith.constant 0 : index
    %c0_36 = arith.constant 0 : index
    %101 = vector.load %arg9[%c0_35, %c0_36] : memref<1x32xf32, #tpu.memory_space<vmem>>, vector<1x32xf32>
    %102 = vector.broadcast %101 : vector<1x32xf32> to vector<16x32xf32>
    %103 = arith.addf %100, %102 : vector<16x32xf32>
    %cst_37 = arith.constant 0.000000e+00 : f32
    %104 = vector.broadcast %cst_37 : f32 to vector<16x32xf32>
    %105 = arith.maximumf %103, %104 : vector<16x32xf32>
    %106 = vector.broadcast %cst_37 : f32 to vector<16x32xf32>
    %107 = arith.subf %103, %106 : vector<16x32xf32>
    %108 = arith.cmpf one, %107, %107 : vector<16x32xf32>
    %109 = vector.broadcast %cst_37 : f32 to vector<16x32xf32>
    %110 = arith.addf %103, %109 : vector<16x32xf32>
    %111 = math.absf %107 : vector<16x32xf32>
    %cst_38 = arith.constant 0.000000e+00 : f32
    %112 = vector.broadcast %cst_38 : f32 to vector<16x32xf32>
    %113 = arith.subf %112, %111 : vector<16x32xf32>
    %114 = math.exp %113 : vector<16x32xf32>
    %115 = math.log1p %114 : vector<16x32xf32>
    %116 = arith.addf %105, %115 : vector<16x32xf32>
    %117 = arith.select %108, %110, %116 : vector<16x32xi1>, vector<16x32xf32>
    %c0_39 = arith.constant 0 : index
    %c0_40 = arith.constant 0 : index
    %118 = vector.load %arg10[%c0_39, %c0_40] : memref<16x32xf32, #tpu.memory_space<vmem>>, vector<16x32xf32>
    %119 = math.exp %118 : vector<16x32xf32>
    %cst_41 = arith.constant 0.000000e+00 : f32
    %120 = vector.broadcast %cst_41 : f32 to vector<16x32xf32>
    %121 = arith.subf %120, %119 : vector<16x32xf32>
    %122 = arith.mulf %117, %92 : vector<16x32xf32>
    %123 = tpu.transpose %96, [1, 0] : vector<16x16xf32> -> vector<16x16xf32>
    %124 = tpu.transpose %98, [1, 0] : vector<16x16xf32> -> vector<16x16xf32>
    %cst_42 = arith.constant 0.000000e+00 : f32
    %125 = vector.broadcast %cst_42 : f32 to vector<16x32xf32>
    %126 = vector.extract_strided_slice %117 {offsets = [0, 0], sizes = [1, 32], strides = [1, 1]} : vector<16x32xf32> to vector<1x32xf32>
    %127 = vector.broadcast %126 : vector<1x32xf32> to vector<16x32xf32>
    %128 = arith.mulf %127, %121 : vector<16x32xf32>
    %129 = math.exp %128 : vector<16x32xf32>
    %130 = vector.extract_strided_slice %123 {offsets = [0, 0], sizes = [16, 1], strides = [1, 1]} : vector<16x16xf32> to vector<16x1xf32>
    %131 = vector.extract_strided_slice %122 {offsets = [0, 0], sizes = [1, 32], strides = [1, 1]} : vector<16x32xf32> to vector<1x32xf32>
    %132 = vector.broadcast %130 : vector<16x1xf32> to vector<16x32xf32>
    %133 = vector.broadcast %131 : vector<1x32xf32> to vector<16x32xf32>
    %134 = arith.mulf %132, %133 : vector<16x32xf32>
    %135 = arith.mulf %129, %125 : vector<16x32xf32>
    %136 = arith.addf %135, %134 : vector<16x32xf32>
    %137 = vector.extract_strided_slice %124 {offsets = [0, 0], sizes = [16, 1], strides = [1, 1]} : vector<16x16xf32> to vector<16x1xf32>
    %138 = vector.broadcast %137 : vector<16x1xf32> to vector<16x32xf32>
    %139 = arith.mulf %138, %136 : vector<16x32xf32>
    %cst_43 = arith.constant dense<0.000000e+00> : vector<32xf32>
    %140 = vector.multi_reduction <add>, %139, %cst_43 [0] : vector<16x32xf32> to vector<32xf32>
    %141 = vector.shape_cast %140 : vector<32xf32> to vector<1x32xf32>
    %c0_44 = arith.constant 0 : index
    %c0_45 = arith.constant 0 : index
    %142 = vector.load %arg18[%c0_44, %c0_45] : memref<16x32xf32, #tpu.memory_space<vmem>>, vector<1x32xf32>
    tpu.vector_store %arg18[%c0_44, %c0_45], %141 {strides = array<i32>} : memref<16x32xf32, #tpu.memory_space<vmem>>, vector<1x32xf32>,
    %143 = vector.extract_strided_slice %117 {offsets = [1, 0], sizes = [1, 32], strides = [1, 1]} : vector<16x32xf32> to vector<1x32xf32>
    %144 = vector.broadcast %143 : vector<1x32xf32> to vector<16x32xf32>
    %145 = arith.mulf %144, %121 : vector<16x32xf32>
    %146 = math.exp %145 : vector<16x32xf32>
    %147 = vector.extract_strided_slice %123 {offsets = [0, 1], sizes = [16, 1], strides = [1, 1]} : vector<16x16xf32> to vector<16x1xf32>
    %148 = vector.extract_strided_slice %122 {offsets = [1, 0], sizes = [1, 32], strides = [1, 1]} : vector<16x32xf32> to vector<1x32xf32>
    %149 = vector.broadcast %147 : vector<16x1xf32> to vector<16x32xf32>
    %150 = vector.broadcast %148 : vector<1x32xf32> to vector<16x32xf32>
    %151 = arith.mulf %149, %150 : vector<16x32xf32>
    %152 = arith.mulf %146, %136 : vector<16x32xf32>
    %153 = arith.addf %152, %151 : vector<16x32xf32>
    %154 = vector.extract_strided_slice %124 {offsets = [0, 1], sizes = [16, 1], strides = [1, 1]} : vector<16x16xf32> to vector<16x1xf32>
    %155 = vector.broadcast %154 : vector<16x1xf32> to vector<16x32xf32>
    %156 = arith.mulf %155, %153 : vector<16x32xf32>
    %cst_46 = arith.constant dense<0.000000e+00> : vector<32xf32>
    %157 = vector.multi_reduction <add>, %156, %cst_46 [0] : vector<16x32xf32> to vector<32xf32>
    %158 = vector.shape_cast %157 : vector<32xf32> to vector<1x32xf32>
    %c1 = arith.constant 1 : index
    %c0_47 = arith.constant 0 : index
    %159 = vector.load %arg18[%c1, %c0_47] : memref<16x32xf32, #tpu.memory_space<vmem>>, vector<1x32xf32>
    tpu.vector_store %arg18[%c1, %c0_47], %158 {strides = array<i32>} : memref<16x32xf32, #tpu.memory_space<vmem>>, vector<1x32xf32>,
    %160 = vector.extract_strided_slice %117 {offsets = [2, 0], sizes = [1, 32], strides = [1, 1]} : vector<16x32xf32> to vector<1x32xf32>
    %161 = vector.broadcast %160 : vector<1x32xf32> to vector<16x32xf32>
    %162 = arith.mulf %161, %121 : vector<16x32xf32>
    %163 = math.exp %162 : vector<16x32xf32>
    %164 = vector.extract_strided_slice %123 {offsets = [0, 2], sizes = [16, 1], strides = [1, 1]} : vector<16x16xf32> to vector<16x1xf32>
    %165 = vector.extract_strided_slice %122 {offsets = [2, 0], sizes = [1, 32], strides = [1, 1]} : vector<16x32xf32> to vector<1x32xf32>
    %166 = vector.broadcast %164 : vector<16x1xf32> to vector<16x32xf32>
    %167 = vector.broadcast %165 : vector<1x32xf32> to vector<16x32xf32>
    %168 = arith.mulf %166, %167 : vector<16x32xf32>
    %169 = arith.mulf %163, %153 : vector<16x32xf32>
    %170 = arith.addf %169, %168 : vector<16x32xf32>
    %171 = vector.extract_strided_slice %124 {offsets = [0, 2], sizes = [16, 1], strides = [1, 1]} : vector<16x16xf32> to vector<16x1xf32>
    %172 = vector.broadcast %171 : vector<16x1xf32> to vector<16x32xf32>
    %173 = arith.mulf %172, %170 : vector<16x32xf32>
    %cst_48 = arith.constant dense<0.000000e+00> : vector<32xf32>
    %174 = vector.multi_reduction <add>, %173, %cst_48 [0] : vector<16x32xf32> to vector<32xf32>
    %175 = vector.shape_cast %174 : vector<32xf32> to vector<1x32xf32>
    %c2 = arith.constant 2 : index
    %c0_49 = arith.constant 0 : index
    %176 = vector.load %arg18[%c2, %c0_49] : memref<16x32xf32, #tpu.memory_space<vmem>>, vector<1x32xf32>
    tpu.vector_store %arg18[%c2, %c0_49], %175 {strides = array<i32>} : memref<16x32xf32, #tpu.memory_space<vmem>>, vector<1x32xf32>,
    %177 = vector.extract_strided_slice %117 {offsets = [3, 0], sizes = [1, 32], strides = [1, 1]} : vector<16x32xf32> to vector<1x32xf32>
    %178 = vector.broadcast %177 : vector<1x32xf32> to vector<16x32xf32>
    %179 = arith.mulf %178, %121 : vector<16x32xf32>
    %180 = math.exp %179 : vector<16x32xf32>
    %181 = vector.extract_strided_slice %123 {offsets = [0, 3], sizes = [16, 1], strides = [1, 1]} : vector<16x16xf32> to vector<16x1xf32>
    %182 = vector.extract_strided_slice %122 {offsets = [3, 0], sizes = [1, 32], strides = [1, 1]} : vector<16x32xf32> to vector<1x32xf32>
    %183 = vector.broadcast %181 : vector<16x1xf32> to vector<16x32xf32>
    %184 = vector.broadcast %182 : vector<1x32xf32> to vector<16x32xf32>
    %185 = arith.mulf %183, %184 : vector<16x32xf32>
    %186 = arith.mulf %180, %170 : vector<16x32xf32>
    %187 = arith.addf %186, %185 : vector<16x32xf32>
    %188 = vector.extract_strided_slice %124 {offsets = [0, 3], sizes = [16, 1], strides = [1, 1]} : vector<16x16xf32> to vector<16x1xf32>
    %189 = vector.broadcast %188 : vector<16x1xf32> to vector<16x32xf32>
    %190 = arith.mulf %189, %187 : vector<16x32xf32>
    %cst_50 = arith.constant dense<0.000000e+00> : vector<32xf32>
    %191 = vector.multi_reduction <add>, %190, %cst_50 [0] : vector<16x32xf32> to vector<32xf32>
    %192 = vector.shape_cast %191 : vector<32xf32> to vector<1x32xf32>
    %c3 = arith.constant 3 : index
    %c0_51 = arith.constant 0 : index
    %193 = vector.load %arg18[%c3, %c0_51] : memref<16x32xf32, #tpu.memory_space<vmem>>, vector<1x32xf32>
    tpu.vector_store %arg18[%c3, %c0_51], %192 {strides = array<i32>} : memref<16x32xf32, #tpu.memory_space<vmem>>, vector<1x32xf32>,
    %194 = vector.extract_strided_slice %117 {offsets = [4, 0], sizes = [1, 32], strides = [1, 1]} : vector<16x32xf32> to vector<1x32xf32>
    %195 = vector.broadcast %194 : vector<1x32xf32> to vector<16x32xf32>
    %196 = arith.mulf %195, %121 : vector<16x32xf32>
    %197 = math.exp %196 : vector<16x32xf32>
    %198 = vector.extract_strided_slice %123 {offsets = [0, 4], sizes = [16, 1], strides = [1, 1]} : vector<16x16xf32> to vector<16x1xf32>
    %199 = vector.extract_strided_slice %122 {offsets = [4, 0], sizes = [1, 32], strides = [1, 1]} : vector<16x32xf32> to vector<1x32xf32>
    %200 = vector.broadcast %198 : vector<16x1xf32> to vector<16x32xf32>
    %201 = vector.broadcast %199 : vector<1x32xf32> to vector<16x32xf32>
    %202 = arith.mulf %200, %201 : vector<16x32xf32>
    %203 = arith.mulf %197, %187 : vector<16x32xf32>
    %204 = arith.addf %203, %202 : vector<16x32xf32>
    %205 = vector.extract_strided_slice %124 {offsets = [0, 4], sizes = [16, 1], strides = [1, 1]} : vector<16x16xf32> to vector<16x1xf32>
    %206 = vector.broadcast %205 : vector<16x1xf32> to vector<16x32xf32>
    %207 = arith.mulf %206, %204 : vector<16x32xf32>
    %cst_52 = arith.constant dense<0.000000e+00> : vector<32xf32>
    %208 = vector.multi_reduction <add>, %207, %cst_52 [0] : vector<16x32xf32> to vector<32xf32>
    %209 = vector.shape_cast %208 : vector<32xf32> to vector<1x32xf32>
    %c4 = arith.constant 4 : index
    %c0_53 = arith.constant 0 : index
    %210 = vector.load %arg18[%c4, %c0_53] : memref<16x32xf32, #tpu.memory_space<vmem>>, vector<1x32xf32>
    tpu.vector_store %arg18[%c4, %c0_53], %209 {strides = array<i32>} : memref<16x32xf32, #tpu.memory_space<vmem>>, vector<1x32xf32>,
    %211 = vector.extract_strided_slice %117 {offsets = [5, 0], sizes = [1, 32], strides = [1, 1]} : vector<16x32xf32> to vector<1x32xf32>
    %212 = vector.broadcast %211 : vector<1x32xf32> to vector<16x32xf32>
    %213 = arith.mulf %212, %121 : vector<16x32xf32>
    %214 = math.exp %213 : vector<16x32xf32>
    %215 = vector.extract_strided_slice %123 {offsets = [0, 5], sizes = [16, 1], strides = [1, 1]} : vector<16x16xf32> to vector<16x1xf32>
    %216 = vector.extract_strided_slice %122 {offsets = [5, 0], sizes = [1, 32], strides = [1, 1]} : vector<16x32xf32> to vector<1x32xf32>
    %217 = vector.broadcast %215 : vector<16x1xf32> to vector<16x32xf32>
    %218 = vector.broadcast %216 : vector<1x32xf32> to vector<16x32xf32>
    %219 = arith.mulf %217, %218 : vector<16x32xf32>
    %220 = arith.mulf %214, %204 : vector<16x32xf32>
    %221 = arith.addf %220, %219 : vector<16x32xf32>
    %222 = vector.extract_strided_slice %124 {offsets = [0, 5], sizes = [16, 1], strides = [1, 1]} : vector<16x16xf32> to vector<16x1xf32>
    %223 = vector.broadcast %222 : vector<16x1xf32> to vector<16x32xf32>
    %224 = arith.mulf %223, %221 : vector<16x32xf32>
    %cst_54 = arith.constant dense<0.000000e+00> : vector<32xf32>
    %225 = vector.multi_reduction <add>, %224, %cst_54 [0] : vector<16x32xf32> to vector<32xf32>
    %226 = vector.shape_cast %225 : vector<32xf32> to vector<1x32xf32>
    %c5 = arith.constant 5 : index
    %c0_55 = arith.constant 0 : index
    %227 = vector.load %arg18[%c5, %c0_55] : memref<16x32xf32, #tpu.memory_space<vmem>>, vector<1x32xf32>
    tpu.vector_store %arg18[%c5, %c0_55], %226 {strides = array<i32>} : memref<16x32xf32, #tpu.memory_space<vmem>>, vector<1x32xf32>,
    %228 = vector.extract_strided_slice %117 {offsets = [6, 0], sizes = [1, 32], strides = [1, 1]} : vector<16x32xf32> to vector<1x32xf32>
    %229 = vector.broadcast %228 : vector<1x32xf32> to vector<16x32xf32>
    %230 = arith.mulf %229, %121 : vector<16x32xf32>
    %231 = math.exp %230 : vector<16x32xf32>
    %232 = vector.extract_strided_slice %123 {offsets = [0, 6], sizes = [16, 1], strides = [1, 1]} : vector<16x16xf32> to vector<16x1xf32>
    %233 = vector.extract_strided_slice %122 {offsets = [6, 0], sizes = [1, 32], strides = [1, 1]} : vector<16x32xf32> to vector<1x32xf32>
    %234 = vector.broadcast %232 : vector<16x1xf32> to vector<16x32xf32>
    %235 = vector.broadcast %233 : vector<1x32xf32> to vector<16x32xf32>
    %236 = arith.mulf %234, %235 : vector<16x32xf32>
    %237 = arith.mulf %231, %221 : vector<16x32xf32>
    %238 = arith.addf %237, %236 : vector<16x32xf32>
    %239 = vector.extract_strided_slice %124 {offsets = [0, 6], sizes = [16, 1], strides = [1, 1]} : vector<16x16xf32> to vector<16x1xf32>
    %240 = vector.broadcast %239 : vector<16x1xf32> to vector<16x32xf32>
    %241 = arith.mulf %240, %238 : vector<16x32xf32>
    %cst_56 = arith.constant dense<0.000000e+00> : vector<32xf32>
    %242 = vector.multi_reduction <add>, %241, %cst_56 [0] : vector<16x32xf32> to vector<32xf32>
    %243 = vector.shape_cast %242 : vector<32xf32> to vector<1x32xf32>
    %c6 = arith.constant 6 : index
    %c0_57 = arith.constant 0 : index
    %244 = vector.load %arg18[%c6, %c0_57] : memref<16x32xf32, #tpu.memory_space<vmem>>, vector<1x32xf32>
    tpu.vector_store %arg18[%c6, %c0_57], %243 {strides = array<i32>} : memref<16x32xf32, #tpu.memory_space<vmem>>, vector<1x32xf32>,
    %245 = vector.extract_strided_slice %117 {offsets = [7, 0], sizes = [1, 32], strides = [1, 1]} : vector<16x32xf32> to vector<1x32xf32>
    %246 = vector.broadcast %245 : vector<1x32xf32> to vector<16x32xf32>
    %247 = arith.mulf %246, %121 : vector<16x32xf32>
    %248 = math.exp %247 : vector<16x32xf32>
    %249 = vector.extract_strided_slice %123 {offsets = [0, 7], sizes = [16, 1], strides = [1, 1]} : vector<16x16xf32> to vector<16x1xf32>
    %250 = vector.extract_strided_slice %122 {offsets = [7, 0], sizes = [1, 32], strides = [1, 1]} : vector<16x32xf32> to vector<1x32xf32>
    %251 = vector.broadcast %249 : vector<16x1xf32> to vector<16x32xf32>
    %252 = vector.broadcast %250 : vector<1x32xf32> to vector<16x32xf32>
    %253 = arith.mulf %251, %252 : vector<16x32xf32>
    %254 = arith.mulf %248, %238 : vector<16x32xf32>
    %255 = arith.addf %254, %253 : vector<16x32xf32>
    %256 = vector.extract_strided_slice %124 {offsets = [0, 7], sizes = [16, 1], strides = [1, 1]} : vector<16x16xf32> to vector<16x1xf32>
    %257 = vector.broadcast %256 : vector<16x1xf32> to vector<16x32xf32>
    %258 = arith.mulf %257, %255 : vector<16x32xf32>
    %cst_58 = arith.constant dense<0.000000e+00> : vector<32xf32>
    %259 = vector.multi_reduction <add>, %258, %cst_58 [0] : vector<16x32xf32> to vector<32xf32>
    %260 = vector.shape_cast %259 : vector<32xf32> to vector<1x32xf32>
    %c7 = arith.constant 7 : index
    %c0_59 = arith.constant 0 : index
    %261 = vector.load %arg18[%c7, %c0_59] : memref<16x32xf32, #tpu.memory_space<vmem>>, vector<1x32xf32>
    tpu.vector_store %arg18[%c7, %c0_59], %260 {strides = array<i32>} : memref<16x32xf32, #tpu.memory_space<vmem>>, vector<1x32xf32>,
    %cst_60 = arith.constant 0.000000e+00 : f32
    %262 = vector.broadcast %cst_60 : f32 to vector<16x32xf32>
    %263 = vector.extract_strided_slice %117 {offsets = [8, 0], sizes = [1, 32], strides = [1, 1]} : vector<16x32xf32> to vector<1x32xf32>
    %264 = vector.broadcast %263 : vector<1x32xf32> to vector<16x32xf32>
    %265 = arith.mulf %264, %121 : vector<16x32xf32>
    %266 = math.exp %265 : vector<16x32xf32>
    %267 = vector.extract_strided_slice %123 {offsets = [0, 8], sizes = [16, 1], strides = [1, 1]} : vector<16x16xf32> to vector<16x1xf32>
    %268 = vector.extract_strided_slice %122 {offsets = [8, 0], sizes = [1, 32], strides = [1, 1]} : vector<16x32xf32> to vector<1x32xf32>
    %269 = vector.broadcast %267 : vector<16x1xf32> to vector<16x32xf32>
    %270 = vector.broadcast %268 : vector<1x32xf32> to vector<16x32xf32>
    %271 = arith.mulf %269, %270 : vector<16x32xf32>
    %272 = arith.mulf %266, %262 : vector<16x32xf32>
    %273 = arith.addf %272, %271 : vector<16x32xf32>
    %274 = vector.extract_strided_slice %124 {offsets = [0, 8], sizes = [16, 1], strides = [1, 1]} : vector<16x16xf32> to vector<16x1xf32>
    %275 = vector.broadcast %274 : vector<16x1xf32> to vector<16x32xf32>
    %276 = arith.mulf %275, %273 : vector<16x32xf32>
    %cst_61 = arith.constant dense<0.000000e+00> : vector<32xf32>
    %277 = vector.multi_reduction <add>, %276, %cst_61 [0] : vector<16x32xf32> to vector<32xf32>
    %278 = vector.shape_cast %277 : vector<32xf32> to vector<1x32xf32>
    %c8 = arith.constant 8 : index
    %c0_62 = arith.constant 0 : index
    %279 = vector.load %arg18[%c8, %c0_62] : memref<16x32xf32, #tpu.memory_space<vmem>>, vector<1x32xf32>
    tpu.vector_store %arg18[%c8, %c0_62], %278 {strides = array<i32>} : memref<16x32xf32, #tpu.memory_space<vmem>>, vector<1x32xf32>,
    %280 = vector.extract_strided_slice %117 {offsets = [9, 0], sizes = [1, 32], strides = [1, 1]} : vector<16x32xf32> to vector<1x32xf32>
    %281 = vector.broadcast %280 : vector<1x32xf32> to vector<16x32xf32>
    %282 = arith.mulf %281, %121 : vector<16x32xf32>
    %283 = math.exp %282 : vector<16x32xf32>
    %284 = vector.extract_strided_slice %123 {offsets = [0, 9], sizes = [16, 1], strides = [1, 1]} : vector<16x16xf32> to vector<16x1xf32>
    %285 = vector.extract_strided_slice %122 {offsets = [9, 0], sizes = [1, 32], strides = [1, 1]} : vector<16x32xf32> to vector<1x32xf32>
    %286 = vector.broadcast %284 : vector<16x1xf32> to vector<16x32xf32>
    %287 = vector.broadcast %285 : vector<1x32xf32> to vector<16x32xf32>
    %288 = arith.mulf %286, %287 : vector<16x32xf32>
    %289 = arith.mulf %283, %273 : vector<16x32xf32>
    %290 = arith.addf %289, %288 : vector<16x32xf32>
    %291 = vector.extract_strided_slice %124 {offsets = [0, 9], sizes = [16, 1], strides = [1, 1]} : vector<16x16xf32> to vector<16x1xf32>
    %292 = vector.broadcast %291 : vector<16x1xf32> to vector<16x32xf32>
    %293 = arith.mulf %292, %290 : vector<16x32xf32>
    %cst_63 = arith.constant dense<0.000000e+00> : vector<32xf32>
    %294 = vector.multi_reduction <add>, %293, %cst_63 [0] : vector<16x32xf32> to vector<32xf32>
    %295 = vector.shape_cast %294 : vector<32xf32> to vector<1x32xf32>
    %c9 = arith.constant 9 : index
    %c0_64 = arith.constant 0 : index
    %296 = vector.load %arg18[%c9, %c0_64] : memref<16x32xf32, #tpu.memory_space<vmem>>, vector<1x32xf32>
    tpu.vector_store %arg18[%c9, %c0_64], %295 {strides = array<i32>} : memref<16x32xf32, #tpu.memory_space<vmem>>, vector<1x32xf32>,
    %297 = vector.extract_strided_slice %117 {offsets = [10, 0], sizes = [1, 32], strides = [1, 1]} : vector<16x32xf32> to vector<1x32xf32>
    %298 = vector.broadcast %297 : vector<1x32xf32> to vector<16x32xf32>
    %299 = arith.mulf %298, %121 : vector<16x32xf32>
    %300 = math.exp %299 : vector<16x32xf32>
    %301 = vector.extract_strided_slice %123 {offsets = [0, 10], sizes = [16, 1], strides = [1, 1]} : vector<16x16xf32> to vector<16x1xf32>
    %302 = vector.extract_strided_slice %122 {offsets = [10, 0], sizes = [1, 32], strides = [1, 1]} : vector<16x32xf32> to vector<1x32xf32>
    %303 = vector.broadcast %301 : vector<16x1xf32> to vector<16x32xf32>
    %304 = vector.broadcast %302 : vector<1x32xf32> to vector<16x32xf32>
    %305 = arith.mulf %303, %304 : vector<16x32xf32>
    %306 = arith.mulf %300, %290 : vector<16x32xf32>
    %307 = arith.addf %306, %305 : vector<16x32xf32>
    %308 = vector.extract_strided_slice %124 {offsets = [0, 10], sizes = [16, 1], strides = [1, 1]} : vector<16x16xf32> to vector<16x1xf32>
    %309 = vector.broadcast %308 : vector<16x1xf32> to vector<16x32xf32>
    %310 = arith.mulf %309, %307 : vector<16x32xf32>
    %cst_65 = arith.constant dense<0.000000e+00> : vector<32xf32>
    %311 = vector.multi_reduction <add>, %310, %cst_65 [0] : vector<16x32xf32> to vector<32xf32>
    %312 = vector.shape_cast %311 : vector<32xf32> to vector<1x32xf32>
    %c10 = arith.constant 10 : index
    %c0_66 = arith.constant 0 : index
    %313 = vector.load %arg18[%c10, %c0_66] : memref<16x32xf32, #tpu.memory_space<vmem>>, vector<1x32xf32>
    tpu.vector_store %arg18[%c10, %c0_66], %312 {strides = array<i32>} : memref<16x32xf32, #tpu.memory_space<vmem>>, vector<1x32xf32>,
    %314 = vector.extract_strided_slice %117 {offsets = [11, 0], sizes = [1, 32], strides = [1, 1]} : vector<16x32xf32> to vector<1x32xf32>
    %315 = vector.broadcast %314 : vector<1x32xf32> to vector<16x32xf32>
    %316 = arith.mulf %315, %121 : vector<16x32xf32>
    %317 = math.exp %316 : vector<16x32xf32>
    %318 = vector.extract_strided_slice %123 {offsets = [0, 11], sizes = [16, 1], strides = [1, 1]} : vector<16x16xf32> to vector<16x1xf32>
    %319 = vector.extract_strided_slice %122 {offsets = [11, 0], sizes = [1, 32], strides = [1, 1]} : vector<16x32xf32> to vector<1x32xf32>
    %320 = vector.broadcast %318 : vector<16x1xf32> to vector<16x32xf32>
    %321 = vector.broadcast %319 : vector<1x32xf32> to vector<16x32xf32>
    %322 = arith.mulf %320, %321 : vector<16x32xf32>
    %323 = arith.mulf %317, %307 : vector<16x32xf32>
    %324 = arith.addf %323, %322 : vector<16x32xf32>
    %325 = vector.extract_strided_slice %124 {offsets = [0, 11], sizes = [16, 1], strides = [1, 1]} : vector<16x16xf32> to vector<16x1xf32>
    %326 = vector.broadcast %325 : vector<16x1xf32> to vector<16x32xf32>
    %327 = arith.mulf %326, %324 : vector<16x32xf32>
    %cst_67 = arith.constant dense<0.000000e+00> : vector<32xf32>
    %328 = vector.multi_reduction <add>, %327, %cst_67 [0] : vector<16x32xf32> to vector<32xf32>
    %329 = vector.shape_cast %328 : vector<32xf32> to vector<1x32xf32>
    %c11 = arith.constant 11 : index
    %c0_68 = arith.constant 0 : index
    %330 = vector.load %arg18[%c11, %c0_68] : memref<16x32xf32, #tpu.memory_space<vmem>>, vector<1x32xf32>
    tpu.vector_store %arg18[%c11, %c0_68], %329 {strides = array<i32>} : memref<16x32xf32, #tpu.memory_space<vmem>>, vector<1x32xf32>,
    %331 = vector.extract_strided_slice %117 {offsets = [12, 0], sizes = [1, 32], strides = [1, 1]} : vector<16x32xf32> to vector<1x32xf32>
    %332 = vector.broadcast %331 : vector<1x32xf32> to vector<16x32xf32>
    %333 = arith.mulf %332, %121 : vector<16x32xf32>
    %334 = math.exp %333 : vector<16x32xf32>
    %335 = vector.extract_strided_slice %123 {offsets = [0, 12], sizes = [16, 1], strides = [1, 1]} : vector<16x16xf32> to vector<16x1xf32>
    %336 = vector.extract_strided_slice %122 {offsets = [12, 0], sizes = [1, 32], strides = [1, 1]} : vector<16x32xf32> to vector<1x32xf32>
    %337 = vector.broadcast %335 : vector<16x1xf32> to vector<16x32xf32>
    %338 = vector.broadcast %336 : vector<1x32xf32> to vector<16x32xf32>
    %339 = arith.mulf %337, %338 : vector<16x32xf32>
    %340 = arith.mulf %334, %324 : vector<16x32xf32>
    %341 = arith.addf %340, %339 : vector<16x32xf32>
    %342 = vector.extract_strided_slice %124 {offsets = [0, 12], sizes = [16, 1], strides = [1, 1]} : vector<16x16xf32> to vector<16x1xf32>
    %343 = vector.broadcast %342 : vector<16x1xf32> to vector<16x32xf32>
    %344 = arith.mulf %343, %341 : vector<16x32xf32>
    %cst_69 = arith.constant dense<0.000000e+00> : vector<32xf32>
    %345 = vector.multi_reduction <add>, %344, %cst_69 [0] : vector<16x32xf32> to vector<32xf32>
    %346 = vector.shape_cast %345 : vector<32xf32> to vector<1x32xf32>
    %c12 = arith.constant 12 : index
    %c0_70 = arith.constant 0 : index
    %347 = vector.load %arg18[%c12, %c0_70] : memref<16x32xf32, #tpu.memory_space<vmem>>, vector<1x32xf32>
    tpu.vector_store %arg18[%c12, %c0_70], %346 {strides = array<i32>} : memref<16x32xf32, #tpu.memory_space<vmem>>, vector<1x32xf32>,
    %348 = vector.extract_strided_slice %117 {offsets = [13, 0], sizes = [1, 32], strides = [1, 1]} : vector<16x32xf32> to vector<1x32xf32>
    %349 = vector.broadcast %348 : vector<1x32xf32> to vector<16x32xf32>
    %350 = arith.mulf %349, %121 : vector<16x32xf32>
    %351 = math.exp %350 : vector<16x32xf32>
    %352 = vector.extract_strided_slice %123 {offsets = [0, 13], sizes = [16, 1], strides = [1, 1]} : vector<16x16xf32> to vector<16x1xf32>
    %353 = vector.extract_strided_slice %122 {offsets = [13, 0], sizes = [1, 32], strides = [1, 1]} : vector<16x32xf32> to vector<1x32xf32>
    %354 = vector.broadcast %352 : vector<16x1xf32> to vector<16x32xf32>
    %355 = vector.broadcast %353 : vector<1x32xf32> to vector<16x32xf32>
    %356 = arith.mulf %354, %355 : vector<16x32xf32>
    %357 = arith.mulf %351, %341 : vector<16x32xf32>
    %358 = arith.addf %357, %356 : vector<16x32xf32>
    %359 = vector.extract_strided_slice %124 {offsets = [0, 13], sizes = [16, 1], strides = [1, 1]} : vector<16x16xf32> to vector<16x1xf32>
    %360 = vector.broadcast %359 : vector<16x1xf32> to vector<16x32xf32>
    %361 = arith.mulf %360, %358 : vector<16x32xf32>
    %cst_71 = arith.constant dense<0.000000e+00> : vector<32xf32>
    %362 = vector.multi_reduction <add>, %361, %cst_71 [0] : vector<16x32xf32> to vector<32xf32>
    %363 = vector.shape_cast %362 : vector<32xf32> to vector<1x32xf32>
    %c13 = arith.constant 13 : index
    %c0_72 = arith.constant 0 : index
    %364 = vector.load %arg18[%c13, %c0_72] : memref<16x32xf32, #tpu.memory_space<vmem>>, vector<1x32xf32>
    tpu.vector_store %arg18[%c13, %c0_72], %363 {strides = array<i32>} : memref<16x32xf32, #tpu.memory_space<vmem>>, vector<1x32xf32>,
    %365 = vector.extract_strided_slice %117 {offsets = [14, 0], sizes = [1, 32], strides = [1, 1]} : vector<16x32xf32> to vector<1x32xf32>
    %366 = vector.broadcast %365 : vector<1x32xf32> to vector<16x32xf32>
    %367 = arith.mulf %366, %121 : vector<16x32xf32>
    %368 = math.exp %367 : vector<16x32xf32>
    %369 = vector.extract_strided_slice %123 {offsets = [0, 14], sizes = [16, 1], strides = [1, 1]} : vector<16x16xf32> to vector<16x1xf32>
    %370 = vector.extract_strided_slice %122 {offsets = [14, 0], sizes = [1, 32], strides = [1, 1]} : vector<16x32xf32> to vector<1x32xf32>
    %371 = vector.broadcast %369 : vector<16x1xf32> to vector<16x32xf32>
    %372 = vector.broadcast %370 : vector<1x32xf32> to vector<16x32xf32>
    %373 = arith.mulf %371, %372 : vector<16x32xf32>
    %374 = arith.mulf %368, %358 : vector<16x32xf32>
    %375 = arith.addf %374, %373 : vector<16x32xf32>
    %376 = vector.extract_strided_slice %124 {offsets = [0, 14], sizes = [16, 1], strides = [1, 1]} : vector<16x16xf32> to vector<16x1xf32>
    %377 = vector.broadcast %376 : vector<16x1xf32> to vector<16x32xf32>
    %378 = arith.mulf %377, %375 : vector<16x32xf32>
    %cst_73 = arith.constant dense<0.000000e+00> : vector<32xf32>
    %379 = vector.multi_reduction <add>, %378, %cst_73 [0] : vector<16x32xf32> to vector<32xf32>
    %380 = vector.shape_cast %379 : vector<32xf32> to vector<1x32xf32>
    %c14 = arith.constant 14 : index
    %c0_74 = arith.constant 0 : index
    %381 = vector.load %arg18[%c14, %c0_74] : memref<16x32xf32, #tpu.memory_space<vmem>>, vector<1x32xf32>
    tpu.vector_store %arg18[%c14, %c0_74], %380 {strides = array<i32>} : memref<16x32xf32, #tpu.memory_space<vmem>>, vector<1x32xf32>,
    %382 = vector.extract_strided_slice %117 {offsets = [15, 0], sizes = [1, 32], strides = [1, 1]} : vector<16x32xf32> to vector<1x32xf32>
    %383 = vector.broadcast %382 : vector<1x32xf32> to vector<16x32xf32>
    %384 = arith.mulf %383, %121 : vector<16x32xf32>
    %385 = math.exp %384 : vector<16x32xf32>
    %386 = vector.extract_strided_slice %123 {offsets = [0, 15], sizes = [16, 1], strides = [1, 1]} : vector<16x16xf32> to vector<16x1xf32>
    %387 = vector.extract_strided_slice %122 {offsets = [15, 0], sizes = [1, 32], strides = [1, 1]} : vector<16x32xf32> to vector<1x32xf32>
    %388 = vector.broadcast %386 : vector<16x1xf32> to vector<16x32xf32>
    %389 = vector.broadcast %387 : vector<1x32xf32> to vector<16x32xf32>
    %390 = arith.mulf %388, %389 : vector<16x32xf32>
    %391 = arith.mulf %385, %375 : vector<16x32xf32>
    %392 = arith.addf %391, %390 : vector<16x32xf32>
    %393 = vector.extract_strided_slice %124 {offsets = [0, 15], sizes = [16, 1], strides = [1, 1]} : vector<16x16xf32> to vector<16x1xf32>
    %394 = vector.broadcast %393 : vector<16x1xf32> to vector<16x32xf32>
    %395 = arith.mulf %394, %392 : vector<16x32xf32>
    %cst_75 = arith.constant dense<0.000000e+00> : vector<32xf32>
    %396 = vector.multi_reduction <add>, %395, %cst_75 [0] : vector<16x32xf32> to vector<32xf32>
    %397 = vector.shape_cast %396 : vector<32xf32> to vector<1x32xf32>
    %c15 = arith.constant 15 : index
    %c0_76 = arith.constant 0 : index
    %398 = vector.load %arg18[%c15, %c0_76] : memref<16x32xf32, #tpu.memory_space<vmem>>, vector<1x32xf32>
    tpu.vector_store %arg18[%c15, %c0_76], %397 {strides = array<i32>} : memref<16x32xf32, #tpu.memory_space<vmem>>, vector<1x32xf32>,
    %c0_77 = arith.constant 0 : index
    %c0_78 = arith.constant 0 : index
    %399 = vector.load %arg18[%c0_77, %c0_78] : memref<16x32xf32, #tpu.memory_space<vmem>>, vector<16x32xf32>
    %c0_79 = arith.constant 0 : index
    %c0_80 = arith.constant 0 : index
    %400 = vector.load %arg11[%c0_79, %c0_80] : memref<32x32xf32, #tpu.memory_space<vmem>>, vector<32x32xf32>
    %cst_81 = arith.constant dense<0.000000e+00> : vector<16x32xf32>
    %401 = tpu.matmul %399, %400, %cst_81 {dimension_numbers = #tpu.dot_dimension_numbers<[1], [0], [0], [1], [0, 0, 1, 1], [], []>} : vector<16x32xf32>, vector<32x32xf32>, vector<16x32xf32> -> vector<16x32xf32>
    %402 = arith.addf %0, %401 : vector<16x32xf32>
    %c0_82 = arith.constant 0 : index
    %c0_83 = arith.constant 0 : index
    %403 = vector.load %arg12[%c0_82, %c0_83] : memref<1x32xf32, #tpu.memory_space<vmem>>, vector<1x32xf32>
    %c0_84 = arith.constant 0 : index
    %c0_85 = arith.constant 0 : index
    %404 = vector.load %arg13[%c0_84, %c0_85] : memref<1x32xf32, #tpu.memory_space<vmem>>, vector<1x32xf32>
    %cst_86 = arith.constant dense<0.000000e+00> : vector<16xf32>
    %405 = vector.multi_reduction <add>, %402, %cst_86 [1] : vector<16x32xf32> to vector<16xf32>
    %406 = vector.shape_cast %405 : vector<16xf32> to vector<16x1xf32>
    %cst_87 = arith.constant 3.200000e+01 : f32
    %407 = vector.broadcast %cst_87 : f32 to vector<16x1xf32>
    %408 = arith.divf %406, %407 : vector<16x1xf32>
    %409 = vector.broadcast %408 : vector<16x1xf32> to vector<16x32xf32>
    %410 = arith.subf %402, %409 : vector<16x32xf32>
    %411 = arith.mulf %410, %410 : vector<16x32xf32>
    %cst_88 = arith.constant dense<0.000000e+00> : vector<16xf32>
    %412 = vector.multi_reduction <add>, %411, %cst_88 [1] : vector<16x32xf32> to vector<16xf32>
    %413 = vector.shape_cast %412 : vector<16xf32> to vector<16x1xf32>
    %cst_89 = arith.constant 3.200000e+01 : f32
    %414 = vector.broadcast %cst_89 : f32 to vector<16x1xf32>
    %415 = arith.divf %413, %414 : vector<16x1xf32>
    %416 = vector.broadcast %408 : vector<16x1xf32> to vector<16x32xf32>
    %417 = arith.subf %402, %416 : vector<16x32xf32>
    %cst_90 = arith.constant 9.99999974E-6 : f32
    %418 = vector.broadcast %cst_90 : f32 to vector<16x1xf32>
    %419 = arith.addf %415, %418 : vector<16x1xf32>
    %420 = math.rsqrt %419 : vector<16x1xf32>
    %421 = vector.broadcast %420 : vector<16x1xf32> to vector<16x32xf32>
    %422 = arith.mulf %417, %421 : vector<16x32xf32>
    %423 = vector.broadcast %403 : vector<1x32xf32> to vector<16x32xf32>
    %424 = arith.mulf %422, %423 : vector<16x32xf32>
    %425 = vector.broadcast %404 : vector<1x32xf32> to vector<16x32xf32>
    %426 = arith.addf %424, %425 : vector<16x32xf32>
    %c0_91 = arith.constant 0 : index
    %c0_92 = arith.constant 0 : index
    %427 = vector.load %arg14[%c0_91, %c0_92] : memref<32x64xf32, #tpu.memory_space<vmem>>, vector<32x64xf32>
    %cst_93 = arith.constant dense<0.000000e+00> : vector<16x64xf32>
    %428 = tpu.matmul %426, %427, %cst_93 {dimension_numbers = #tpu.dot_dimension_numbers<[1], [0], [0], [1], [0, 0, 1, 1], [], []>} : vector<16x32xf32>, vector<32x64xf32>, vector<16x64xf32> -> vector<16x64xf32>
    %429 = arith.negf %428 : vector<16x64xf32>
    %430 = math.exp %429 : vector<16x64xf32>
    %cst_94 = arith.constant 1.000000e+00 : f32
    %431 = vector.broadcast %cst_94 : f32 to vector<16x64xf32>
    %432 = arith.addf %431, %430 : vector<16x64xf32>
    %433 = arith.divf %431, %432 : vector<16x64xf32>
    %434 = arith.mulf %428, %433 : vector<16x64xf32>
    %c0_95 = arith.constant 0 : index
    %c0_96 = arith.constant 0 : index
    %435 = vector.load %arg15[%c0_95, %c0_96] : memref<32x64xf32, #tpu.memory_space<vmem>>, vector<32x64xf32>
    %cst_97 = arith.constant dense<0.000000e+00> : vector<16x64xf32>
    %436 = tpu.matmul %426, %435, %cst_97 {dimension_numbers = #tpu.dot_dimension_numbers<[1], [0], [0], [1], [0, 0, 1, 1], [], []>} : vector<16x32xf32>, vector<32x64xf32>, vector<16x64xf32> -> vector<16x64xf32>
    %437 = arith.mulf %434, %436 : vector<16x64xf32>
    %c0_98 = arith.constant 0 : index
    %c0_99 = arith.constant 0 : index
    %438 = vector.load %arg16[%c0_98, %c0_99] : memref<64x32xf32, #tpu.memory_space<vmem>>, vector<64x32xf32>
    %cst_100 = arith.constant dense<0.000000e+00> : vector<16x32xf32>
    %439 = tpu.matmul %437, %438, %cst_100 {dimension_numbers = #tpu.dot_dimension_numbers<[1], [0], [0], [1], [0, 0, 1, 1], [], []>} : vector<16x64xf32>, vector<64x32xf32>, vector<16x32xf32> -> vector<16x32xf32>
    %440 = arith.addf %402, %439 : vector<16x32xf32>
    %c0_101 = arith.constant 0 : index
    %c0_102 = arith.constant 0 : index
    %441 = vector.load %arg17[%c0_101, %c0_102] : memref<16x32xf32, #tpu.memory_space<vmem>>, vector<16x32xf32>
    tpu.vector_store %arg17[%c0_101, %c0_102], %440 {strides = array<i32>} : memref<16x32xf32, #tpu.memory_space<vmem>>, vector<16x32xf32>,
    return
  }
}

</mosaic_0001>

<bundles_post_ra>
// kernel: bhasa_mamba_forward.5
= control target key start
LH: loop header
LB: loop body
LE: loop exit
PB: predicated region body
PF: predicated region fallthrough
CT: control target
= control target key end

     0   :  { %vm22_vm0 = vcmask 261120   ;;  %s281_s0 = inlined_call_operand.vmem [shape: f32[16,32], index: 0, kind: input, shape index: {}]   ;;  %s282_s1 = inlined_call_operand.vmem [shape: f32[1,32], index: 1, kind: input, shape index: {}]   ;;  %s283_s2 = inlined_call_operand.vmem [shape: f32[1,32], index: 2, kind: input, shape index: {}]   ;;  %s284_s3 = inlined_call_operand.vmem [shape: f32[32,64], index: 3, kind: input, shape index: {}]   ;;  %s285_s4 = inlined_call_operand.hbm [shape: f32[16,64], index: 4, kind: output, shape index: {}]  }
   0x1   :  { %v18_v0 = vld [vmem:[%s281_s0] sm:$0xff]  ;;  %v19_v1 = vld [vmem:[%s281_s0 + $0x8] sm:$0xff] }
   0x2   :  { %9 = vsyncpa [#allocation3], 0  ;;  %v23_v2 = vsel %vm22_vm0, %v18_v0, 0.0  ;;  %v26_v3 = vsel %vm22_vm0, %v19_v1, 0.0  ;;  %v69_v14 = vld [vmem:[%s284_s3 + $0x18] sm:$0xff]  ;;  %v68_v15 = vld [vmem:[%s284_s3 + $0x10] sm:$0xff] }
   0x3   :  { %24 = vadd.xlane.f32.xlu0 %v23_v2  ;;  %180 = vmatprep.subr.mxu0 %v69_v14  ;;  %v67_v16 = vld [vmem:[%s284_s3 + $0x8] sm:$0xff]  ;;  %v66_v17 = vld [vmem:[%s284_s3] sm:$0xff]  ;;  %s220_s3 = smov [#allocation2]   ;;  %vm151_vm1 = vcmask 523264  }
   0x4   :  { %181 = vmatpush3.msra.mxu0 %v69_v14  ;;  %v170_v25 = vld [vmem:[%s282_s1] ss:$0 sm:$0xff]  ;;  %s159_s30 = sshll.u32 %s220_s3, 4  ;;  %s160_s30 = int_to_ptr.vmem [resolvable:$true] %s159_s30 }
   0x5   :  { %182 = vmatprep.subr.mxu0 %v68_v15  ;;  %v171_v27 = vld [vmem:[%s283_s2] ss:$0 sm:$0xff]  ;;  %s198_s1 = scalar_lea.vmem %s160_s30, 256  ;;  %p203_p1 = scmp.lt.s32.totalorder %s160_s30, %s160_s30 }
   0x6   :  { %183 = vmatpush3.msra.mxu0 %v68_v15  ;;  %p199_p0 = scmp.ne.s32.totalorder %s160_s30, %s198_s1  ;;  %p204_p2 = scmp.lt.s32.totalorder %s198_s1, %s198_s1 }
   0x7   :  { %27 = vadd.xlane.f32.xlu0 %v26_v3  ;;  %184 = vmatprep.subr.mxu0 %v67_v16 }
   0x8   :  { %185 = vmatpush3.msra.mxu0 %v67_v16  ;;  %p205_p3 = por %p204_p2, %p203_p1 }
   0x9   :  { %186 = vmatprep.subr.mxu0 %v66_v17 }
   0xa   :  { %187 = vmatpush3.msra.mxu0 %v66_v17  ;;  %p206_p4 = pnand %p205_p3, %p199_p0 }
  0x8c   :  { %v25_v4 = vpop.xlane.xlu0 %24 }
  0x8d   :  { %v30_v5 = vmul.f32 0.03125, %v25_v4 }
  0x8f   :  { %v32_v6 = vsub.f32 %v18_v0, %v30_v5 }
  0x90   :  { %v28_v7 = vpop.xlane.xlu0 %27 }
  0x91   :  { %v31_v8 = vmul.f32 0.03125, %v28_v7  ;;  %v34_v9 = vmul.f32 %v32_v6, %v32_v6 }
  0x93   :  { %v33_v10 = vsub.f32 %v19_v1, %v31_v8  ;;  %v36_v11 = vsel %vm22_vm0, %v34_v9, 0.0 }
  0x94   :  { %37 = vadd.xlane.f32.xlu1 %v36_v11 }
  0x95   :  { %v35_v12 = vmul.f32 %v33_v10, %v33_v10 }
  0x97   :  { %v39_v13 = vsel %vm22_vm0, %v35_v12, 0.0 }
  0x98   :  { %40 = vadd.xlane.f32.xlu1 %v39_v13 }
 0x11d   :  { %v38_v18 = vpop.xlane.xlu1 %37 }
 0x11e   :  { %v42_v19 = vmul.f32 0.03125, %v38_v18 }
 0x120   :  { %v44_v20 = vadd.f32 1e-05, %v42_v19 }
 0x121   :  { %v41_v21 = vpop.xlane.xlu1 %40 }
 0x122   :  { %194 = vrsqrt.f32 %v44_v20  ;;  %v43_v22 = vmul.f32 0.03125, %v41_v21 }
 0x124   :  { %v45_v23 = vadd.f32 1e-05, %v43_v22 }
 0x126   :  { %196 = vrsqrt.f32 %v45_v23 }
 0x12f   :  { %v195_v24 = vpop.eup %194 }
 0x130   :  { %v48_v26 = vmul.f32 %v195_v24, %v32_v6 }
 0x132   :  { %v56_v28 = vmul.f32 %v170_v25, %v48_v26 }
 0x133   :  { %v197_v29 = vpop.eup %196 }
 0x134   :  { %v49_v30 = vmul.f32 %v197_v29, %v33_v10  ;;  %v64_v31 = vadd.f32 %v171_v27, %v56_v28 }
 0x136   :  { %v57_v32 = vmul.f32 %v170_v25, %v49_v30  ;;  %188 = vmatprep.mubr.msk.f32.mxu0 %vm22_vm0, %v64_v31 }
 0x138   :  { %v65_v33 = vadd.f32 %v171_v27, %v57_v32 }
 0x13a   :  { %189 = vmatmul.mubr.msk.f32.vlgmr.msra.gmra.mxu0 %vm22_vm0, %v65_v33 }
 0x1fa   :  { %v190_v34 = vpop.f32.mrf.mxu0 }
 0x1fb   :  { %153 = vst.msk [vmem:[#allocation2 + $0x8] sm:$0xff] %vm151_vm1, %v190_v34 }
 0x1fc   :  { %v142_v35 = vpop.f32.mrf.mxu0 }
 0x1fd   :  { %152 = vst.msk [vmem:[#allocation2] sm:$0xff] %vm151_vm1, %v142_v35 }
 0x1fe   :  { %209 = shalt.err (!%p206_p4)
}
 0x1ff   :  { %s221_s2 = smov 128   ;;  %s222_s5 = smov 8  }
 0x200   :  { %165 = dma.vmem_to_hbm [thread:$0]  %s160_s30, 256, %s285_s4, [#allocation3], %s221_s2, %s221_s2, %s222_s5  }
 0x201   :  { %218 = dma.done.wait [#allocation3], 256  }
 0x202   :  { %219 = vsyncadd [#allocation3], 4294967040 }
 0x203   :  { %169 = vsyncpa [#allocation3], 1 }

// kernel: bhasa_mamba_forward.3
= control target key start
LH: loop header
LB: loop body
LE: loop exit
PB: predicated region body
PF: predicated region fallthrough
CT: control target
= control target key end

     0   :  { %vm60_vm0 = vcmask 261120   ;;  %v115_v29 = vlaneseq  ;;  %vm107_vm1 = vcmask 1042432   ;;  %vm182_vm4 = vcmask 1046528   ;;  %s3268_s0 = inlined_call_operand.vmem [shape: f32[16,32], index: 0, kind: input, shape index: {}]   ;;  %s3269_s5 = inlined_call_operand.vmem [shape: f32[32,8], index: 5, kind: input, shape index: {}]   ;;  %s3270_s7 = inlined_call_operand.vmem [shape: f32[32,16], index: 7, kind: input, shape index: {}]   ;;  %s3271_s6 = inlined_call_operand.vmem [shape: f32[32,16], index: 6, kind: input, shape index: {}]   ;;  %s3272_s1 = inlined_call_operand.vmem [shape: f32[1,32], index: 1, kind: input, shape index: {}]   ;;  %s3273_s2 = inlined_call_operand.vmem [shape: f32[1,32], index: 2, kind: input, shape index: {}]   ;;  %s3274_s3 = inlined_call_operand.vmem [shape: f32[4,32], index: 3, kind: input, shape index: {}]   ;;  %s3275_s4 = inlined_call_operand.vmem [shape: f32[1,32], index: 4, kind: input, shape index: {}]   ;;  %s3276_s8 = inlined_call_operand.vmem [shape: f32[8,32], index: 8, kind: input, shape index: {}]   ;;  %s3277_s9 = inlined_call_operand.vmem [shape: f32[1,32], index: 9, kind: input, shape index: {}]   ;;  %s3278_s10 = inlined_call_operand.vmem [shape: f32[16,32], index: 10, kind: input, shape index: {}]   ;;  %s3279_s11 = inlined_call_operand.vmem [shape: f32[32,32], index: 11, kind: input, shape index: {}]   ;;  %s3280_s14 = inlined_call_operand.vmem [shape: f32[32,64], index: 14, kind: input, shape index: {}]   ;;  %s3281_s15 = inlined_call_operand.vmem [shape: f32[32,64], index: 15, kind: input, shape index: {}]   ;;  %s3282_s12 = inlined_call_operand.vmem [shape: f32[1,32], index: 12, kind: input, shape index: {}]   ;;  %s3283_s13 = inlined_call_operand.vmem [shape: f32[1,32], index: 13, kind: input, shape index: {}]   ;;  %s3284_s16 = inlined_call_operand.vmem [shape: f32[64,32], index: 16, kind: input, shape index: {}]   ;;  %s3285_s17 = inlined_call_operand.vmem [shape: f32[16,32], index: 17, kind: output, shape index: {}]  }
   0x1   :  { %3290 = sst [smem:[#allocation30_spill]] %s3268_s0  ;;  %v423_v15 = vld [vmem:[%s3270_s7 + $0x18] sm:$0xff]  ;;  %v422_v17 = vld [vmem:[%s3270_s7 + $0x10] sm:$0xff]  ;;  %v421_v19 = vld [vmem:[%s3270_s7 + $0x8] sm:$0xff]  ;;  %vm210_vm7 = vcmask 1045504   ;;  %vm232_vm10 = vcmask 1044480  }
   0x2   :  { %3291 = sst [smem:[#allocation31_spill]] %s3269_s5  ;;  %1980 = vmatprep.subr.mxu0 %v423_v15  ;;  %v420_v21 = vld [vmem:[%s3270_s7] sm:$0xff]  ;;  %v2374_v22 = vld [vmem:[%s3271_s6 + $0x18] sm:$0xff]  ;;  %v2377_v30 = vshrl.u32 %v115_v29, 7  ;;  %vm507_vm11 = vcmask 64512  }
   0x3   :  { %s3292_s26 = sld [smem:[#allocation30_spill]]  ;;  %1981 = vmatpush3.msra.mxu0 %v423_v15  ;;  %v1883_v32 = vld [vmem:[%s3272_s1] ss:$0 sm:$0xff] }
   0x4   :  { %s3293_s30 = sld [smem:[#allocation31_spill]]  ;;  %1982 = vmatprep.subr.mxu0 %v422_v17  ;;  %v1884_v34 = vld [vmem:[%s3273_s2] ss:$0 sm:$0xff]  ;;  %v2386_v35 = vsub.s32 0, %v2377_v30  ;;  %v2392_v38 = vsub.s32 1, %v2377_v30  ;;  %v117_v39 = vadd.s32 8, %v2377_v30 }
   0x5   :  { %1983 = vmatpush3.msra.mxu0 %v422_v17  ;;  %v104_v37 = vld [vmem:[%s3274_s3] sm:$0xf]  ;;  %v2396_v41 = vsub.s32 2, %v2377_v30  ;;  %v122_v44 = vand.u32 7, %v2377_v30  ;;  %v2401_v46 = vsub.s32 3, %v2377_v30 }
   0x6   :  { %1984 = vmatprep.subr.mxu0 %v421_v19  ;;  %v153_v45 = vrot.slane %v104_v37, %v2386_v35  ;;  %v169_v49 = vrot.slane %v104_v37, %v2392_v38  ;;  %v129_v50 = vand.u32 7, %v117_v39  ;;  %v1885_v63 = vld [vmem:[%s3275_s4] ss:$0 sm:$0xff] }
   0x7   :  { %1985 = vmatpush3.msra.mxu0 %v421_v19  ;;  %v197_v51 = vrot.slane %v104_v37, %v2396_v41  ;;  %vm156_vm2 = vcmp.ge.s32.totalorder %v122_v44, 3  ;;  %vm173_vm3 = vcmp.ge.s32.totalorder %v122_v44, 2  ;;  %v225_v55 = vrot.slane %v104_v37, %v2401_v46 }
   0x8   :  { %1986 = vmatprep.subr.mxu0 %v420_v21  ;;  %vm157_vm5 = vcmp.ge.s32.totalorder %v129_v50, 3  ;;  %vm201_vm6 = vcmp.ge.s32.totalorder %v122_v44, 1  ;;  %vm174_vm8 = vcmp.ge.s32.totalorder %v129_v50, 2  ;;  %vm202_vm9 = vcmp.ge.s32.totalorder %v129_v50, 1  ;;  %v343_v50 = vld [vmem:[%s3271_s6 + $0x10] sm:$0xff] }
   0x9   :  { %v56_v0 = vld [vmem:[%s3292_s26] sm:$0xff]  ;;  %v57_v1 = vld [vmem:[%s3292_s26 + $0x8] sm:$0xff]  ;;  %1987 = vmatpush3.msra.mxu0 %v420_v21 }
   0xa   :  { %v61_v2 = vsel %vm60_vm0, %v56_v0, 0.0  ;;  %v64_v3 = vsel %vm60_vm0, %v57_v1, 0.0  ;;  %v259_v14 = vld [vmem:[%s3293_s30 + $0x18] sm:$0xff]  ;;  %v258_v16 = vld [vmem:[%s3293_s30 + $0x10] sm:$0xff]  ;;  %v257_v18 = vld [vmem:[%s3293_s30 + $0x8] sm:$0xff] }
   0xb   :  { %62 = vadd.xlane.f32.xlu0 %v61_v2  ;;  %1958 = vmatprep.subr.mxu1 %v259_v14  ;;  %v256_v20 = vld [vmem:[%s3293_s30] sm:$0xff] }
   0xc   :  { %1959 = vmatpush3.msra.mxu1 %v259_v14 }
   0xd   :  { %1960 = vmatprep.subr.mxu1 %v258_v16 }
   0xe   :  { %1961 = vmatpush3.msra.mxu1 %v258_v16 }
   0xf   :  { %65 = vadd.xlane.f32.xlu0 %v64_v3  ;;  %1962 = vmatprep.subr.mxu1 %v257_v18 }
  0x10   :  { %1963 = vmatpush3.msra.mxu1 %v257_v18 }
  0x11   :  { %1964 = vmatprep.subr.mxu1 %v256_v20 }
  0x12   :  { %1965 = vmatpush3.msra.mxu1 %v256_v20 }
  0x13   :  { %1969 = vmatprep.subr.mxu1 %v2374_v22 }
  0x94   :  { %v63_v4 = vpop.xlane.xlu0 %62 }
  0x95   :  { %v68_v5 = vmul.f32 0.03125, %v63_v4 }
  0x97   :  { %v70_v6 = vsub.f32 %v56_v0, %v68_v5 }
  0x98   :  { %v66_v7 = vpop.xlane.xlu0 %65 }
  0x99   :  { %v69_v8 = vmul.f32 0.03125, %v66_v7  ;;  %v72_v9 = vmul.f32 %v70_v6, %v70_v6 }
  0x9b   :  { %v71_v10 = vsub.f32 %v57_v1, %v69_v8  ;;  %v74_v11 = vsel %vm60_vm0, %v72_v9, 0.0 }
  0x9c   :  { %75 = vadd.xlane.f32.xlu1 %v74_v11 }
  0x9d   :  { %v73_v12 = vmul.f32 %v71_v10, %v71_v10 }
  0x9f   :  { %v77_v13 = vsel %vm60_vm0, %v73_v12, 0.0 }
  0xa0   :  { %78 = vadd.xlane.f32.xlu1 %v77_v13 }
 0x125   :  { %v76_v23 = vpop.xlane.xlu1 %75 }
 0x126   :  { %v80_v24 = vmul.f32 0.03125, %v76_v23 }
 0x128   :  { %v82_v25 = vadd.f32 1e-05, %v80_v24 }
 0x129   :  { %v79_v26 = vpop.xlane.xlu1 %78 }
 0x12a   :  { %2129 = vrsqrt.f32 %v82_v25  ;;  %v81_v27 = vmul.f32 0.03125, %v79_v26 }
 0x12c   :  { %v83_v28 = vadd.f32 1e-05, %v81_v27 }
 0x12e   :  { %2131 = vrsqrt.f32 %v83_v28 }
 0x137   :  { %v2130_v31 = vpop.eup %2129 }
 0x138   :  { %v86_v33 = vmul.f32 %v2130_v31, %v70_v6 }
 0x13a   :  { %v94_v36 = vmul.f32 %v1883_v32, %v86_v33 }
 0x13b   :  { %v2132_v40 = vpop.eup %2131 }
 0x13c   :  { %v102_v42 = vadd.f32 %v1884_v34, %v94_v36  ;;  %v87_v43 = vmul.f32 %v2132_v40, %v71_v10 }
 0x13e   :  { %v108_v47 = vrot.slane %v102_v42, 5  ;;  %v95_v48 = vmul.f32 %v1883_v32, %v87_v43 }
 0x140   :  { %v103_v52 = vadd.f32 %v1884_v34, %v95_v48  ;;  %v114_v53 = vsel %vm107_vm1, 0.0, %v108_v47 }
 0x141   :  { %v154_v54 = vmul.f32 %v153_v45, %v114_v53  ;;  %v170_v57 = vmul.f32 %v169_v49, %v114_v53  ;;  %v198_v58 = vmul.f32 %v197_v51, %v114_v53  ;;  %v226_v13 = vmul.f32 %v225_v55, %v114_v53 }
 0x142   :  { %v109_v56 = vrot.slane %v103_v52, 5  ;;  %v341_v52 = vld [vmem:[%s3271_s6] sm:$0xff] }
 0x143   :  { %v162_v60 = vsel %vm156_vm2, %v154_v54, 0.0  ;;  %v183_v4 = vrot.slane %v170_v57, 1  ;;  %v211_v9 = vrot.slane %v198_v58, 2  ;;  %v233_v27 = vrot.slane %v226_v13, 3 }
 0x144   :  { %v110_v59 = vsel %vm107_vm1, %v108_v47, %v109_v56  ;;  %v172_v61 = vmul.f32 %v169_v49, %v109_v56  ;;  %v200_v62 = vmul.f32 %v197_v51, %v109_v56  ;;  %v228_v7 = vmul.f32 %v225_v55, %v109_v56 }
 0x145   :  { %v171_v0 = vmul.f32 %v169_v49, %v110_v59  ;;  %v199_v1 = vmul.f32 %v197_v51, %v110_v59  ;;  %v227_v2 = vmul.f32 %v225_v55, %v110_v59  ;;  %v155_v3 = vmul.f32 %v153_v45, %v110_v59  ;;  %v342_v51 = vld [vmem:[%s3271_s6 + $0x8] sm:$0xff] }
 0x146   :  { %v186_v5 = vrot.slane %v172_v61, 1  ;;  %v214_v6 = vrot.slane %v200_v62, 2  ;;  %v164_v12 = vadd.f32 %v1885_v63, %v162_v60  ;;  %v236_v23 = vrot.slane %v228_v7, 3 }
 0x147   :  { %v184_v8 = vrot.slane %v171_v0, 1  ;;  %v212_v10 = vrot.slane %v199_v1, 2  ;;  %v163_v11 = vsel %vm157_vm5, %v155_v3, 0.0  ;;  %v234_v17 = vrot.slane %v227_v2, 3 }
 0x148   :  { %v165_v14 = vadd.f32 %v1885_v63, %v163_v11  ;;  %v2231_v59 = vmov 0   ;;  %v2232_v60 = vmov 1   ;;  %v2233_v62 = vmov 2  }
 0x149   :  { %v185_v15 = vsel %vm182_vm4, %v183_v4, %v184_v8  ;;  %v213_v16 = vsel %vm210_vm7, %v211_v9, %v212_v10  ;;  %v187_v18 = vsel %vm182_vm4, %v184_v8, %v186_v5  ;;  %v215_v21 = vsel %vm210_vm7, %v212_v10, %v214_v6 }
 0x14a   :  { %v190_v19 = vsel %vm173_vm3, %v185_v15, 0.0  ;;  %v191_v20 = vsel %vm174_vm8, %v187_v18, 0.0  ;;  %v218_v26 = vsel %vm201_vm6, %v213_v16, 0.0  ;;  %v219_v28 = vsel %vm202_vm9, %v215_v21, 0.0 }
 0x14b   :  { %v192_v24 = vadd.f32 %v190_v19, %v164_v12  ;;  %v193_v25 = vadd.f32 %v191_v20, %v165_v14  ;;  %v235_v32 = vsel %vm232_vm10, %v233_v27, %v234_v17  ;;  %v237_v33 = vsel %vm232_vm10, %v234_v17, %v236_v23  ;;  %v1894_v23 = vld [vmem:[%s3277_s9] ss:$0 sm:$0xff] }
 0x14c   :  { %v2234_v63 = vmov 4   ;;  %v2235_v0 = vmov 3   ;;  %v2236_v1 = vmov 7   ;;  %v2237_v2 = vmov 5  }
 0x14d   :  { %v220_v29 = vadd.f32 %v218_v26, %v192_v24  ;;  %v221_v31 = vadd.f32 %v219_v28, %v193_v25  ;;  %v2238_v3 = vmov 10   ;;  %v2239_v4 = vmov 6  }
 0x14e   :  { %v2240_v5 = vmov 13   ;;  %v2241_v7 = vmov 8   ;;  %v2242_v8 = vmov 9   ;;  %v2243_v9 = vmov 11  }
 0x14f   :  { %v240_v34 = vadd.f32 %v235_v32, %v220_v29  ;;  %v241_v36 = vadd.f32 %v237_v33, %v221_v31  ;;  %v2244_v10 = vmov 12   ;;  %v2245_v12 = vmov 14  }
 0x150   :  { %v2246_v14 = vmov 15   ;;  %vm750_vm1 = vcmask 253952   ;;  %vm1793_vm2 = vcmask 523264  }
 0x151   :  { %v1886_v37 = vmul.f32 -1.442695, %v240_v34  ;;  %v1887_v39 = vmul.f32 -1.442695, %v241_v36 }
 0x153   :  { %2133 = vpow2.f32 %v1886_v37 }
 0x154   :  { %2135 = vpow2.f32 %v1887_v39 }
 0x160   :  { %v2134_v40 = vpop.eup %2133 }
 0x161   :  { %v2136_v42 = vpop.eup %2135  ;;  %v248_v43 = vadd.f32 1.0, %v2134_v40 }
 0x162   :  { %v249_v45 = vadd.f32 1.0, %v2136_v42 }
 0x163   :  { %2137 = vrcp.f32 %v248_v43 }
 0x164   :  { %2139 = vrcp.f32 %v249_v45 }
 0x170   :  { %v2138_v44 = vpop.eup %2137 }
 0x171   :  { %v2140_v47 = vpop.eup %2139  ;;  %v2419_v48 = vmul.f32 %v2138_v44, %v240_v34 }
 0x172   :  { %v2421_v49 = vmul.f32 %v2140_v47, %v241_v36 }
 0x173   :  { %1966 = vmatprep.mubr.msk.f32.mxu1 %vm60_vm0, %v2419_v48  ;;  %1988 = vmatprep.mubr.msk.f32.mxu0 %vm60_vm0, %v2419_v48 }
 0x174   :  { %1967 = vmatmul.mubr.msk.f32.vlgmr.msra.gmra.mxu1 %vm60_vm0, %v2421_v49  ;;  %1989 = vmatmul.mubr.msk.f32.vlgmr.msra.gmra.mxu0 %vm60_vm0, %v2421_v49 }
 0x175   :  { %1970 = vmatpush3.msra.mxu1 %v2374_v22  ;;  %1977 = vmatprep.mubr.msk.f32.mxu1 %vm60_vm0, %v2419_v48  ;;  %v499_v22 = vld [vmem:[%s3276_s8] sm:$0xff] }
 0x176   :  { %1971 = vmatprep.subr.mxu1 %v343_v50 }
 0x177   :  { %1972 = vmatpush3.msra.mxu1 %v343_v50 }
 0x178   :  { %1973 = vmatprep.subr.mxu1 %v342_v51 }
 0x179   :  { %1974 = vmatpush3.msra.mxu1 %v342_v51 }
 0x17a   :  { %1975 = vmatprep.subr.mxu1 %v341_v52 }
 0x17b   :  { %1976 = vmatpush3.msra.mxu1 %v341_v52 }
 0x17c   :  { %1978 = vmatmul.mubr.msk.f32.vlgmr.msra.gmra.mxu1 %vm60_vm0, %v2421_v49  ;;  %1991 = vmatprep.subr.mxu1 %v499_v22 }
 0x17d   :  { %1992 = vmatpush3.msra.mxu1 %v499_v22 }
 0x234   :  { %v1968_v53 = vpop.f32.mrf.mxu1  ;;  %v1990_v54 = vpop.f32.mrf.mxu0 }
 0x236   :  { %v332_v55 = vpop.f32.mrf.mxu1  ;;  %v490_v56 = vpop.f32.mrf.mxu0 }
 0x237   :  { %667 = vxpose.xlu1.b32.start [1/2] (short) (narrow) %v490_v56, 16  ;;  %1993 = vmatprep.mubr.msk.f32.mxu1 %vm507_vm11, %v332_v55 }
 0x238   :  { %1994 = vmatmul.mubr.msk.f32.vlgmr.msra.gmra.mxu1 %vm507_vm11, %v1968_v53 }
 0x23b   :  { %668 = vxpose.xlu1.b32.end [2/2] (short) (narrow) %v1990_v54, 16 }
 0x23c   :  { %v1979_v57 = vpop.f32.mrf.mxu1 }
 0x23e   :  { %v411_v58 = vpop.f32.mrf.mxu1 }
 0x23f   :  { %635 = vxpose.xlu0.b32.start [1/2] (short) (narrow) %v411_v58, 16 }
 0x243   :  { %636 = vxpose.xlu0.b32.end [2/2] (short) (narrow) %v1979_v57, 16  ;;  %v625_v57 = vld [vmem:[%s3278_s10] sm:$0xff] }
 0x259   :  { %2065 = vset.pattern.permute.xlu1 %v2231_v59 }
 0x26c   :  { %2066 = vset.pattern.permute.xlu0 %v2232_v60 }
 0x2b3   :  { %v2450_v61 = vpop.trf.xlu1 }
 0x2b4   :  { %731 = vperm.xlu1 %2065, %v2450_v61   ;;  %781 = vperm.xlu0 %2066, %v2450_v61  }
 0x2b7   :  { %v2470_v6 = vpop.trf.xlu1 }
 0x2b8   :  { %2067 = vset.pattern.permute.xlu1 %v2233_v62  ;;  %2069 = vset.pattern.permute.xlu0 %v2234_v63 }
 0x2b9   :  { %829 = vperm.xlu1 %2067, %v2450_v61   ;;  %925 = vperm.xlu0 %2069, %v2450_v61  }
 0x2bb   :  { %v2488_v11 = vpop.trf.xlu0 }
 0x2bd   :  { %2068 = vset.pattern.permute.xlu1 %v2235_v0  ;;  %2072 = vset.pattern.permute.xlu0 %v2236_v1 }
 0x2be   :  { %877 = vperm.xlu1 %2068, %v2450_v61   ;;  %1069 = vperm.xlu0 %2072, %v2450_v61  }
 0x2bf   :  { %v2514_v13 = vpop.trf.xlu0 }
 0x2c2   :  { %2070 = vset.pattern.permute.xlu1 %v2237_v2  ;;  %2075 = vset.pattern.permute.xlu0 %v2238_v3 }
 0x2c3   :  { %973 = vperm.xlu1 %2070, %v2450_v61   ;;  %1213 = vperm.xlu0 %2075, %v2450_v61  }
 0x2c7   :  { %2071 = vset.pattern.permute.xlu1 %v2239_v4  ;;  %2078 = vset.pattern.permute.xlu0 %v2240_v5 }
 0x2c8   :  { %1021 = vperm.xlu1 %2071, %v2450_v61   ;;  %1357 = vperm.xlu0 %2078, %v2450_v61  }
 0x2cc   :  { %2073 = vset.pattern.permute.xlu1 %v2241_v7  ;;  %2082 = vset.pattern.permute.xlu0 %v2233_v62 }
 0x2cd   :  { %1117 = vperm.xlu1 %2073, %v2450_v61   ;;  %833 = vperm.xlu0 %2082, %v2470_v6  }
 0x2d1   :  { %2074 = vset.pattern.permute.xlu1 %v2242_v8  ;;  %2085 = vset.pattern.permute.xlu0 %v2237_v2 }
 0x2d2   :  { %1165 = vperm.xlu1 %2074, %v2450_v61   ;;  %977 = vperm.xlu0 %2085, %v2470_v6  }
 0x2d6   :  { %2076 = vset.pattern.permute.xlu1 %v2243_v9  ;;  %2088 = vset.pattern.permute.xlu0 %v2241_v7 }
 0x2d7   :  { %1261 = vperm.xlu1 %2076, %v2450_v61   ;;  %1121 = vperm.xlu0 %2088, %v2470_v6  }
 0x2db   :  { %2077 = vset.pattern.permute.xlu1 %v2244_v10  ;;  %2091 = vset.pattern.permute.xlu0 %v2243_v9 }
 0x2dc   :  { %1309 = vperm.xlu1 %2077, %v2450_v61   ;;  %1265 = vperm.xlu0 %2091, %v2470_v6  }
 0x2e0   :  { %2079 = vset.pattern.permute.xlu1 %v2245_v12  ;;  %2094 = vset.pattern.permute.xlu0 %v2231_v59 }
 0x2e1   :  { %1405 = vperm.xlu1 %2079, %v2450_v61   ;;  %711 = vperm.xlu0 %2094, %v2488_v11  }
 0x2e5   :  { %2080 = vset.pattern.permute.xlu1 %v2231_v59  ;;  %2096 = vset.pattern.permute.xlu0 %v2232_v60 }
 0x2e6   :  { %736 = vperm.xlu1 %2080, %v2470_v6   ;;  %763 = vperm.xlu0 %2096, %v2488_v11  }
 0x2ea   :  { %2081 = vset.pattern.permute.xlu1 %v2232_v60  ;;  %2099 = vset.pattern.permute.xlu0 %v2238_v3 }
 0x2eb   :  { %785 = vperm.xlu1 %2081, %v2470_v6   ;;  %1195 = vperm.xlu0 %2099, %v2488_v11  }
 0x2ef   :  { %2083 = vset.pattern.permute.xlu1 %v2235_v0  ;;  %2102 = vset.pattern.permute.xlu0 %v2234_v63 }
 0x2f0   :  { %881 = vperm.xlu1 %2083, %v2470_v6   ;;  %907 = vperm.xlu0 %2102, %v2488_v11  }
 0x2f4   :  { %2084 = vset.pattern.permute.xlu1 %v2234_v63  ;;  %2105 = vset.pattern.permute.xlu0 %v2240_v5 }
 0x2f5   :  { %929 = vperm.xlu1 %2084, %v2470_v6   ;;  %1339 = vperm.xlu0 %2105, %v2488_v11  }
 0x2f8   :  { %v1995_v20 = vpop.f32.mrf.mxu1 }
 0x2f9   :  { %2086 = vset.pattern.permute.xlu1 %v2239_v4  ;;  %2108 = vset.pattern.permute.xlu0 %v2236_v1  ;;  %v2578_v26 = vadd.f32 %v1995_v20, %v1894_v23 }
 0x2fa   :  { %1025 = vperm.xlu1 %2086, %v2470_v6   ;;  %1051 = vperm.xlu0 %2108, %v2488_v11   ;;  %v580_v24 = vpop.f32.mrf.mxu1 }
 0x2fb   :  { %v2581_v27 = vadd.f32 %v1894_v23, %v580_v24  ;;  %v596_v28 = vand.u32 2147483647, %v2578_v26  ;;  %vm592_vm14 = vcmp.ne.f32.partialorder %v2578_v26, %v2578_v26 }
 0x2fd   :  { %v595_v31 = vand.u32 2147483647, %v2581_v27  ;;  %v598_v32 = vsub.f32 0.0, %v596_v28  ;;  %v589_v24 = vmax.f32 %v2581_v27, 0.0  ;;  %vm591_vm15 = vcmp.ne.f32.partialorder %v2581_v27, %v2581_v27 }
 0x2fe   :  { %2087 = vset.pattern.permute.xlu1 %v2236_v1  ;;  %2113 = vset.pattern.permute.xlu0 %v2242_v8 }
 0x2ff   :  { %1073 = vperm.xlu1 %2087, %v2470_v6   ;;  %1151 = vperm.xlu0 %2113, %v2514_v13   ;;  %v597_v33 = vsub.f32 0.0, %v595_v31  ;;  %v601_v36 = vmul.f32 1.442695, %v598_v32 }
 0x301   :  { %v599_v37 = vmul.f32 1.442695, %v597_v33  ;;  %2141 = vpow2.f32 %v601_v36 }
 0x303   :  { %2089 = vset.pattern.permute.xlu1 %v2242_v8  ;;  %2116 = vset.pattern.permute.xlu0 %v2235_v0  ;;  %2143 = vpow2.f32 %v599_v37 }
 0x304   :  { %1169 = vperm.xlu1 %2089, %v2470_v6   ;;  %863 = vperm.xlu0 %2116, %v2514_v13  }
 0x308   :  { %2090 = vset.pattern.permute.xlu1 %v2238_v3  ;;  %2119 = vset.pattern.permute.xlu0 %v2244_v10 }
 0x309   :  { %1217 = vperm.xlu1 %2090, %v2470_v6   ;;  %1295 = vperm.xlu0 %2119, %v2514_v13  }
 0x30d   :  { %2092 = vset.pattern.permute.xlu1 %v2244_v10  ;;  %2122 = vset.pattern.permute.xlu0 %v2239_v4 }
 0x30e   :  { %1313 = vperm.xlu1 %2092, %v2470_v6   ;;  %1007 = vperm.xlu0 %2122, %v2514_v13   ;;  %v2142_v44 = vpop.eup %2141 }
 0x30f   :  { %v612_v52 = vadd.f32 1.0, %v2142_v44 }
 0x310   :  { %v2144_v50 = vpop.eup %2143 }
 0x311   :  { %v603_v22 = vadd.f32 1.0, %v2144_v50  ;;  %2145 = vlog2.f32 %v612_v52 }
 0x312   :  { %2093 = vset.pattern.permute.xlu1 %v2240_v5  ;;  %2125 = vset.pattern.permute.xlu0 %v2246_v14 }
 0x313   :  { %1361 = vperm.xlu1 %2093, %v2470_v6   ;;  %1439 = vperm.xlu0 %2125, %v2514_v13   ;;  %2147 = vlog2.f32 %v603_v22 }
 0x317   :  { %2095 = vset.pattern.permute.xlu1 %v2241_v7  ;;  %2126 = vset.pattern.permute.xlu0 %v2245_v12 }
 0x318   :  { %1099 = vperm.xlu1 %2095, %v2488_v11   ;;  %1409 = vperm.xlu0 %2126, %v2470_v6  }
 0x31c   :  { %2097 = vset.pattern.permute.xlu1 %v2242_v8  ;;  %2128 = vset.pattern.permute.xlu0 %v2246_v14  ;;  %v609_v8 = vand.u32 2147483647, %v2144_v50 }
 0x31d   :  { %1147 = vperm.xlu1 %2097, %v2488_v11  }
 0x31e   :  { %vm610_vm13 = vcmp.lt.f32.partialorder %v609_v8, 0.0004427343 }
 0x321   :  { %2098 = vset.pattern.permute.xlu1 %v2233_v62 }
 0x322   :  { %811 = vperm.xlu1 %2098, %v2488_v11  }
 0x326   :  { %2100 = vset.pattern.permute.xlu1 %v2235_v0  ;;  %v2146_v0 = vpop.eup %2145 }
 0x327   :  { %859 = vperm.xlu1 %2100, %v2488_v11  }
 0x32b   :  { %2101 = vset.pattern.permute.xlu1 %v2243_v9 }
 0x32c   :  { %1243 = vperm.xlu1 %2101, %v2488_v11  }
 0x32f   :  { %v2549_v15 = vpop.permute.xlu1 %731  ;;  %v2598_v40 = vpop.permute.xlu0 %781 }
 0x330   :  { %2103 = vset.pattern.permute.xlu1 %v2244_v10 }
 0x331   :  { %1291 = vperm.xlu1 %2103, %v2488_v11  }
 0x334   :  { %v2553_v16 = vpop.permute.xlu1 %829  ;;  %v2606_v45 = vpop.permute.xlu0 %925 }
 0x335   :  { %3294 = vst [vmem:[#allocation3_spill] sm:$0xff] %v2553_v16  ;;  %2104 = vset.pattern.permute.xlu1 %v2237_v2  ;;  %3303 = vst [vmem:[#allocation12_spill] sm:$0xff] %v2606_v45 }
 0x336   :  { %955 = vperm.xlu1 %2104, %v2488_v11  }
 0x339   :  { %v2557_v17 = vpop.permute.xlu1 %877  ;;  %v2613_v51 = vpop.permute.xlu0 %1069 }
 0x33a   :  { %3295 = vst [vmem:[#allocation4_spill] sm:$0xff] %v2557_v17  ;;  %2106 = vset.pattern.permute.xlu1 %v2239_v4  ;;  %3305 = vst [vmem:[#allocation14_spill] sm:$0xff] %v2613_v51 }
 0x33b   :  { %1003 = vperm.xlu1 %2106, %v2488_v11  }
 0x33e   :  { %v2561_v18 = vpop.permute.xlu1 %973  ;;  %v2620_v54 = vpop.permute.xlu0 %1213 }
 0x33f   :  { %3296 = vst [vmem:[#allocation5_spill] sm:$0xff] %v2561_v18  ;;  %2107 = vset.pattern.permute.xlu1 %v2245_v12 }
 0x340   :  { %1387 = vperm.xlu1 %2107, %v2488_v11  }
 0x343   :  { %v2565_v19 = vpop.permute.xlu1 %1021  ;;  %v2626_v56 = vpop.permute.xlu0 %1357 }
 0x344   :  { %3297 = vst [vmem:[#allocation6_spill] sm:$0xff] %v2565_v19  ;;  %2109 = vset.pattern.permute.xlu1 %v2246_v14  ;;  %3308 = vst [vmem:[#allocation17_spill] sm:$0xff] %v2626_v56 }
 0x345   :  { %1435 = vperm.xlu1 %2109, %v2488_v11  }
 0x348   :  { %v2569_v21 = vpop.permute.xlu1 %1117 }
 0x349   :  { %2110 = vset.pattern.permute.xlu1 %v2231_v59  ;;  %v615_v59 = vmul.f32 -0.5, %v2142_v44 }
 0x34a   :  { %716 = vperm.xlu1 %2110, %v2514_v13  }
 0x34b   :  { %v616_v4 = vadd.f32 1.0, %v615_v59  ;;  %v1477_v59 = vld [vmem:[%s3279_s11 + $0x18] sm:$0xff] }
 0x34c   :  { %1996 = vmatprep.subr.mxu1 %v1477_v59 }
 0x34d   :  { %v2576_v25 = vpop.permute.xlu1 %1165  ;;  %v617_v11 = vmul.f32 %v2142_v44, %v616_v4  ;;  %1997 = vmatpush3.msra.mxu1 %v1477_v59  ;;  %v1475_v4 = vld [vmem:[%s3279_s11 + $0x8] sm:$0xff]  ;;  %v2731_v59 = vsub.s32 5, %v2377_v30 }
 0x34e   :  { %2111 = vset.pattern.permute.xlu1 %v2241_v7 }
 0x34f   :  { %1103 = vperm.xlu1 %2111, %v2514_v13  }
 0x352   :  { %v2585_v29 = vpop.permute.xlu1 %1261 }
 0x353   :  { %3298 = vst [vmem:[#allocation7_spill] sm:$0xff] %v2585_v29  ;;  %2112 = vset.pattern.permute.xlu1 %v2232_v60  ;;  %v627_v60 = vmul.f32 1.442695, %v625_v57 }
 0x354   :  { %767 = vperm.xlu1 %2112, %v2514_v13  }
 0x355   :  { %2149 = vpow2.f32 %v627_v60  ;;  %v1476_v60 = vld [vmem:[%s3279_s11 + $0x10] sm:$0xff] }
 0x356   :  { %1998 = vmatprep.subr.mxu1 %v1476_v60 }
 0x357   :  { %v2590_v34 = vpop.permute.xlu1 %1309  ;;  %1999 = vmatpush3.msra.mxu1 %v1476_v60 }
 0x358   :  { %3299 = vst [vmem:[#allocation8_spill] sm:$0xff] %v2590_v34  ;;  %2114 = vset.pattern.permute.xlu1 %v2233_v62  ;;  %v606_v62 = vmul.f32 -0.5, %v2144_v50  ;;  %2000 = vmatprep.subr.mxu1 %v1475_v4 }
 0x359   :  { %815 = vperm.xlu1 %2114, %v2514_v13   ;;  %2001 = vmatpush3.msra.mxu1 %v1475_v4 }
 0x35a   :  { %v607_v7 = vadd.f32 1.0, %v606_v62 }
 0x35c   :  { %v2594_v39 = vpop.permute.xlu1 %1405 }
 0x35d   :  { %3300 = vst [vmem:[#allocation9_spill] sm:$0xff] %v2594_v39  ;;  %2115 = vset.pattern.permute.xlu1 %v2238_v3  ;;  %v2148_v3 = vpop.eup %2147 }
 0x35e   :  { %1199 = vperm.xlu1 %2115, %v2514_v13  }
 0x361   :  { %v2600_v42 = vpop.permute.xlu1 %736 }
 0x362   :  { %3301 = vst [vmem:[#allocation10_spill] sm:$0xff] %v2600_v42  ;;  %2117 = vset.pattern.permute.xlu1 %v2243_v9  ;;  %v605_v9 = vmul.f32 0.6931472, %v2148_v3  ;;  %v2150_v33 = vpop.eup %2149 }
 0x363   :  { %1247 = vperm.xlu1 %2117, %v2514_v13   ;;  %v2669_v52 = vsub.f32 0.0, %v2150_v33 }
 0x366   :  { %v2604_v43 = vpop.permute.xlu1 %785 }
 0x367   :  { %3302 = vst [vmem:[#allocation11_spill] sm:$0xff] %v2604_v43  ;;  %2118 = vset.pattern.permute.xlu1 %v2234_v63  ;;  %v2635_v63 = vpop.permute.xlu0 %833 }
 0x368   :  { %911 = vperm.xlu1 %2118, %v2514_v13   ;;  %3310 = vst [vmem:[#allocation19_spill] sm:$0xff] %v2635_v63 }
 0x36b   :  { %v2610_v47 = vpop.permute.xlu1 %881  ;;  %v2641_v10 = vpop.permute.xlu0 %977 }
 0x36c   :  { %3304 = vst [vmem:[#allocation13_spill] sm:$0xff] %v2610_v47  ;;  %2120 = vset.pattern.permute.xlu1 %v2237_v2  ;;  %3312 = vst [vmem:[#allocation21_spill] sm:$0xff] %v2641_v10 }
 0x36d   :  { %959 = vperm.xlu1 %2120, %v2514_v13  }
 0x36f   :  { %v2648_v28 = vpop.permute.xlu0 %1121 }
 0x370   :  { %v2616_v53 = vpop.permute.xlu1 %929  ;;  %3314 = vst [vmem:[#allocation23_spill] sm:$0xff] %v2648_v28 }
 0x371   :  { %3306 = vst [vmem:[#allocation15_spill] sm:$0xff] %v2616_v53  ;;  %2121 = vset.pattern.permute.xlu1 %v2240_v5  ;;  %v618_v5 = vand.u32 2147483647, %v2142_v44 }
 0x372   :  { %1343 = vperm.xlu1 %2121, %v2514_v13  }
 0x373   :  { %vm619_vm12 = vcmp.lt.f32.partialorder %v618_v5, 0.0004427343  ;;  %v2664_v44 = vpop.permute.xlu0 %1265  ;;  %v1474_v5 = vld [vmem:[%s3279_s11] sm:$0xff] }
 0x374   :  { %3317 = vst [vmem:[#allocation26_spill] sm:$0xff] %v2664_v44  ;;  %2002 = vmatprep.subr.mxu1 %v1474_v5 }
 0x375   :  { %v2622_v55 = vpop.permute.xlu1 %1025  ;;  %2003 = vmatpush3.msra.mxu1 %v1474_v5  ;;  %v2744_v5 = vsub.s32 7, %v2377_v30 }
 0x376   :  { %3307 = vst [vmem:[#allocation16_spill] sm:$0xff] %v2622_v55  ;;  %2123 = vset.pattern.permute.xlu1 %v2245_v12 }
 0x377   :  { %1391 = vperm.xlu1 %2123, %v2514_v13  }
 0x37a   :  { %v2631_v58 = vpop.permute.xlu1 %1073 }
 0x37b   :  { %3309 = vst [vmem:[#allocation18_spill] sm:$0xff] %v2631_v58  ;;  %2124 = vset.pattern.permute.xlu1 %v2236_v1  ;;  %v614_v1 = vmul.f32 0.6931472, %v2146_v0  ;;  %v2689_v0 = vpop.permute.xlu0 %711 }
 0x37c   :  { %1055 = vperm.xlu1 %2124, %v2514_v13   ;;  %v608_v13 = vmul.f32 %v2144_v50, %v607_v7  ;;  %v626_v50 = vld [vmem:[%s3278_s10 + $0x8] sm:$0xff] }
 0x37d   :  { %v620_v20 = vsel %vm619_vm12, %v617_v11, %v614_v1 }
 0x37e   :  { %v611_v23 = vsel %vm610_vm13, %v608_v13, %v605_v9 }
 0x37f   :  { %v2637_v2 = vpop.permute.xlu1 %1169  ;;  %v621_v32 = vadd.f32 %v611_v23, %v589_v24  ;;  %v2709_v13 = vpop.permute.xlu0 %763 }
 0x380   :  { %3311 = vst [vmem:[#allocation20_spill] sm:$0xff] %v2637_v2  ;;  %2127 = vset.pattern.permute.xlu1 %v2246_v14  ;;  %v590_v14 = vmax.f32 %v2578_v26, 0.0 }
 0x381   :  { %1453 = vperm.xlu1 %2127, %v2450_v61  }
 0x382   :  { %v622_v61 = vadd.f32 %v620_v20, %v590_v14 }
 0x383   :  { %v2721_v33 = vpop.permute.xlu0 %1195 }
 0x384   :  { %v2643_v12 = vpop.permute.xlu1 %1217  ;;  %v2655_v36 = vsel %vm592_vm14, %v2578_v26, %v622_v61 }
 0x385   :  { %3313 = vst [vmem:[#allocation22_spill] sm:$0xff] %v2643_v12  ;;  %1457 = vperm.xlu1 %2127, %v2470_v6   ;;  %v2660_v6 = vsel %vm591_vm15, %v2581_v27, %v621_v32  ;;  %v2673_v26 = vrot.slane %v2655_v36, %v2386_v35  ;;  %v629_v27 = vmul.f32 1.442695, %v626_v50  ;;  %v2703_v8 = vrot.slane %v2655_v36, %v2392_v38 }
 0x386   :  { %v2677_v22 = vrot.slane %v2660_v6, %v2386_v35  ;;  %v2707_v11 = vrot.slane %v2660_v6, %v2392_v38  ;;  %v2719_v24 = vrot.slane %v2655_v36, %v2396_v41  ;;  %v2724_v50 = vsub.s32 4, %v2377_v30 }
 0x387   :  { %v1092_v62 = vmul.f32 %v2673_v26, %v2669_v52  ;;  %2151 = vpow2.f32 %v629_v27  ;;  %v1140_v20 = vmul.f32 %v2703_v8, %v2669_v52  ;;  %v2728_v27 = vrot.slane %v2660_v6, %v2396_v41 }
 0x388   :  { %v703_v3 = vmul.f32 %v2677_v22, %v2669_v52  ;;  %v756_v14 = vmul.f32 %v2707_v11, %v2669_v52  ;;  %v2741_v4 = vrot.slane %v2660_v6, %v2724_v50  ;;  %v2761_v58 = vmul.f32 %v2660_v6, %v2419_v48 }
 0x389   :  { %v2650_v31 = vpop.permute.xlu1 %1313  ;;  %v1094_v7 = vmul.f32 1.442695, %v1092_v62  ;;  %v1142_v61 = vmul.f32 1.442695, %v1140_v20  ;;  %v2737_v62 = vrot.slane %v2660_v6, %v2401_v46  ;;  %v2753_v20 = vsub.s32 6, %v2377_v30 }
 0x38a   :  { %3315 = vst [vmem:[#allocation24_spill] sm:$0xff] %v2650_v31  ;;  %v705_v9 = vmul.f32 1.442695, %v703_v3  ;;  %v758_v32 = vmul.f32 1.442695, %v756_v14  ;;  %v2757_v14 = vrot.slane %v2655_v36, %v2401_v46  ;;  %v2765_v51 = vrot.slane %v2655_v36, %v2724_v50 }
 0x38b   :  { %2153 = vpow2.f32 %v1094_v7  ;;  %v1188_v7 = vmul.f32 %v2719_v24, %v2669_v52  ;;  %v2771_v30 = vrot.slane %v2655_v36, %v2731_v59  ;;  %v2781_v48 = vrot.slane %v2660_v6, %v2731_v59 }
 0x38c   :  { %2155 = vpow2.f32 %v705_v9  ;;  %v2750_v9 = vmul.f32 %v2655_v36, %v2421_v49  ;;  %v804_v49 = vmul.f32 %v2728_v27, %v2669_v52  ;;  %v900_v10 = vmul.f32 %v2741_v4, %v2669_v52 }
 0x38d   :  { %2157 = vpow2.f32 %v1142_v61  ;;  %v852_v61 = vmul.f32 %v2737_v62, %v2669_v52  ;;  %v1190_v55 = vmul.f32 1.442695, %v1188_v7  ;;  %v2797_v31 = vrot.slane %v2660_v6, %v2753_v20 }
 0x38e   :  { %v2662_v37 = vpop.permute.xlu1 %1361  ;;  %2159 = vpow2.f32 %v758_v32  ;;  %v2785_v32 = vrot.slane %v2655_v36, %v2744_v5  ;;  %v2801_v19 = vrot.slane %v2750_v9, %v2386_v35  ;;  %v1236_v7 = vmul.f32 %v2757_v14, %v2669_v52 }
 0x38f   :  { %3316 = vst [vmem:[#allocation25_spill] sm:$0xff] %v2662_v37  ;;  %v2777_v37 = vpop.permute.xlu0 %907  ;;  %v2807_v18 = vrot.slane %v2761_v58, %v2386_v35  ;;  %v2811_v12 = vrot.slane %v2655_v36, %v2753_v20  ;;  %v806_v47 = vmul.f32 1.442695, %v804_v49  ;;  %v2817_v56 = vrot.slane %v2761_v58, %v2392_v38 }
 0x390   :  { %3318 = vst [vmem:[#allocation27_spill] sm:$0xff] %v2801_v19  ;;  %v854_v2 = vmul.f32 1.442695, %v852_v61  ;;  %v1332_v35 = vmul.f32 %v2771_v30, %v2669_v52  ;;  %2161 = vpow2.f32 %v1190_v55  ;;  %v902_v49 = vmul.f32 1.442695, %v900_v10 }
 0x391   :  { %v723_v36 = vmul.f32 %v2807_v18, %v2689_v0  ;;  %v948_v34 = vmul.f32 %v2781_v48, %v2669_v52  ;;  %v1238_v45 = vmul.f32 1.442695, %v1236_v7  ;;  %v996_v17 = vmul.f32 %v2797_v31, %v2669_v52 }
 0x392   :  { %2163 = vpow2.f32 %v806_v47  ;;  %v2845_v42 = vrot.slane %v2750_v9, %v2392_v38 }
 0x393   :  { %v2679_v57 = vpop.permute.xlu1 %1099  ;;  %2165 = vpow2.f32 %v854_v2  ;;  %v998_v47 = vmul.f32 1.442695, %v996_v17 }
 0x394   :  { %v2152_v3 = vpop.eup %2151  ;;  %v1110_v43 = vmul.f32 %v2801_v19, %v2679_v57  ;;  %v2833_v19 = vpop.permute.xlu0 %1339  ;;  %2167 = vpow2.f32 %v902_v49 }
 0x395   :  { %v2775_v39 = vsub.f32 0.0, %v2152_v3  ;;  %v2793_v3 = vrot.slane %v2660_v6, %v2744_v5  ;;  %v1284_v6 = vmul.f32 %v2765_v51, %v2669_v52  ;;  %2169 = vpow2.f32 %v1238_v45 }
 0x397   :  { %v1044_v57 = vmul.f32 %v2793_v3, %v2669_v52  ;;  %v1286_v0 = vmul.f32 1.442695, %v1284_v6  ;;  %v704_v55 = vmul.f32 %v2677_v22, %v2775_v39  ;;  %v1093_v7 = vmul.f32 %v2673_v26, %v2775_v39 }
 0x398   :  { %v2699_v1 = vpop.permute.xlu1 %1147  ;;  %v2154_v44 = vpop.eup %2153  ;;  %v1141_v26 = vmul.f32 %v2703_v8, %v2775_v39  ;;  %v757_v38 = vmul.f32 %v2707_v11, %v2775_v39  ;;  %v805_v8 = vmul.f32 %v2728_v27, %v2775_v39  ;;  %v2867_v11 = vrot.slane %v2750_v9, %v2396_v41 }
 0x399   :  { %v2156_v63 = vpop.eup %2155  ;;  %v1112_v29 = vmul.f32 0.0, %v2154_v44  ;;  %v1334_v44 = vmul.f32 1.442695, %v1332_v35  ;;  %v1046_v6 = vmul.f32 1.442695, %v1044_v57  ;;  %2171 = vpow2.f32 %v1286_v0  ;;  %v2861_v57 = vpop.permute.xlu0 %1051 }
 0x39a   :  { %v725_v61 = vmul.f32 0.0, %v2156_v63  ;;  %v950_v63 = vmul.f32 1.442695, %v948_v34  ;;  %v707_v22 = vmul.f32 1.442695, %v704_v55  ;;  %v1158_v34 = vmul.f32 %v2845_v42, %v2699_v1 }
 0x39b   :  { %v2837_v10 = vadd.f32 %v1112_v29, %v1110_v43  ;;  %v1380_v29 = vmul.f32 %v2811_v12, %v2669_v52  ;;  %v2158_v43 = vpop.eup %2157  ;;  %2173 = vpow2.f32 %v1334_v44  ;;  %v1096_v45 = vmul.f32 1.442695, %v1093_v7 }
 0x39c   :  { %v2841_v16 = vadd.f32 %v725_v61, %v723_v36  ;;  %v2160_v35 = vpop.eup %2159  ;;  %v774_v36 = vmul.f32 %v2817_v56, %v2709_v13  ;;  %2175 = vpow2.f32 %v950_v63  ;;  %v853_v61 = vmul.f32 %v2737_v62, %v2775_v39 }
 0x39d   :  { %v2715_v23 = vpop.permute.xlu1 %811  ;;  %v1160_v17 = vmul.f32 %v2158_v43, %v2837_v10  ;;  %2177 = vpow2.f32 %v998_v47  ;;  %v1382_v1 = vmul.f32 1.442695, %v1380_v29  ;;  %v2873_v13 = vrot.slane %v2761_v58, %v2396_v41 }
 0x39e   :  { %v776_v49 = vmul.f32 %v2160_v35, %v2841_v16  ;;  %2179 = vpow2.f32 %v1046_v6  ;;  %v1144_v0 = vmul.f32 1.442695, %v1141_v26  ;;  %v1189_v55 = vmul.f32 %v2719_v24, %v2775_v39  ;;  %v2162_v6 = vpop.eup %2161 }
 0x39f   :  { %v2877_v44 = vadd.f32 %v1160_v17, %v1158_v34  ;;  %2181 = vpow2.f32 %v707_v22  ;;  %v760_v7 = vmul.f32 1.442695, %v757_v38  ;;  %v1237_v63 = vmul.f32 %v2757_v14, %v2775_v39  ;;  %v2893_v22 = vpop.permute.xlu0 %1151  ;;  %v2164_v38 = vpop.eup %2163 }
 0x3a0   :  { %v2883_v47 = vadd.f32 %v776_v49, %v774_v36  ;;  %2183 = vpow2.f32 %v1096_v45  ;;  %v808_v62 = vmul.f32 1.442695, %v805_v8  ;;  %v1285_v41 = vmul.f32 %v2765_v51, %v2775_v39  ;;  %v2166_v45 = vpop.eup %2165 }
 0x3a1   :  { %v2889_v24 = vrot.slane %v2750_v9, %v2401_v46  ;;  %2185 = vpow2.f32 %v1382_v1  ;;  %v856_v29 = vmul.f32 1.442695, %v853_v61  ;;  %v901_v43 = vmul.f32 %v2741_v4, %v2775_v39  ;;  %v2907_v8 = vpop.eup %2167 }
 0x3a2   :  { %v2733_v60 = vpop.permute.xlu1 %859  ;;  %v822_v14 = vmul.f32 %v2873_v13, %v2715_v23  ;;  %2187 = vpow2.f32 %v1144_v0  ;;  %v1192_v26 = vmul.f32 1.442695, %v1189_v55  ;;  %v949_v51 = vmul.f32 %v2781_v48, %v2775_v39  ;;  %v2170_v61 = vpop.eup %2169 }
 0x3a3   :  { %v1208_v35 = vmul.f32 %v2162_v6, %v2877_v44  ;;  %2189 = vpow2.f32 %v760_v7  ;;  %v1240_v34 = vmul.f32 1.442695, %v1237_v63  ;;  %v997_v17 = vmul.f32 %v2797_v31, %v2775_v39  ;;  %v2923_v6 = vpop.permute.xlu0 %863 }
 0x3a4   :  { %v824_v4 = vmul.f32 %v2164_v38, %v2883_v47  ;;  %2191 = vpow2.f32 %v808_v62  ;;  %v1288_v23 = vmul.f32 1.442695, %v1285_v41  ;;  %v1333_v49 = vmul.f32 %v2771_v30, %v2775_v39 }
 0x3a5   :  { %v1206_v48 = vmul.f32 %v2867_v11, %v2721_v33  ;;  %2193 = vpow2.f32 %v856_v29  ;;  %v904_v1 = vmul.f32 1.442695, %v901_v43  ;;  %v1381_v31 = vmul.f32 %v2811_v12, %v2775_v39 }
 0x3a6   :  { %v2913_v0 = vadd.f32 %v824_v4, %v822_v14  ;;  %2195 = vpow2.f32 %v1192_v26  ;;  %v952_v55 = vmul.f32 1.442695, %v949_v51  ;;  %v1045_v7 = vmul.f32 %v2793_v3, %v2775_v39  ;;  %v2172_v63 = vpop.eup %2171 }
 0x3a7   :  { %v2789_v53 = vpop.permute.xlu1 %1243  ;;  %v2917_v30 = vadd.f32 %v1208_v35, %v1206_v48  ;;  %2197 = vpow2.f32 %v1240_v34  ;;  %v1000_v62 = vmul.f32 1.442695, %v997_v17  ;;  %v1428_v33 = vmul.f32 %v2785_v32, %v2669_v52 }
 0x3a8   :  { %v2921_v41 = vpop.eup %2173  ;;  %v2927_v12 = vrot.slane %v2761_v58, %v2401_v46  ;;  %2199 = vpow2.f32 %v1288_v23  ;;  %v1336_v29 = vmul.f32 1.442695, %v1333_v49  ;;  %v1429_v3 = vmul.f32 %v2785_v32, %v2775_v39 }
 0x3a9   :  { %v2931_v43 = vpop.eup %2175  ;;  %v1254_v14 = vmul.f32 %v2889_v24, %v2789_v53  ;;  %2201 = vpow2.f32 %v904_v1  ;;  %v1384_v52 = vmul.f32 1.442695, %v1381_v31  ;;  %v872_v38 = vmul.f32 %v2166_v45, %v2913_v0 }
 0x3aa   :  { %v2937_v51 = vpop.eup %2177  ;;  %v870_v46 = vmul.f32 %v2927_v12, %v2733_v60  ;;  %2203 = vpow2.f32 %v952_v55  ;;  %v1048_v35 = vmul.f32 1.442695, %v1045_v7  ;;  %v2946_v39 = vrot.slane %v2750_v9, %v2731_v59  ;;  %v1296_v55 = vpop.permute.xlu0 %1295 }
 0x3ab   :  { %v2942_v34 = vpop.eup %2179  ;;  %v1256_v53 = vmul.f32 %v2170_v61, %v2917_v30  ;;  %2205 = vpow2.f32 %v1000_v62  ;;  %v1430_v32 = vmul.f32 1.442695, %v1428_v33  ;;  %v2951_v4 = vrot.slane %v2761_v58, %v2724_v50 }
 0x3ac   :  { %v2827_v28 = vpop.permute.xlu1 %1291  ;;  %v2182_v17 = vpop.eup %2181  ;;  %v2955_v60 = vrot.slane %v2761_v58, %v2744_v5  ;;  %2207 = vpow2.f32 %v1336_v29  ;;  %v1432_v45 = vmul.f32 1.442695, %v1429_v3  ;;  %v739_v49 = vmul.f32 %v2549_v15, %v2841_v16 }
 0x3ad   :  { %v2184_v23 = vpop.eup %2183  ;;  %v1301_v48 = vrot.slane %v2750_v9, %v2724_v50  ;;  %v2961_v1 = vadd.f32 %v1256_v53, %v1254_v14  ;;  %2209 = vpow2.f32 %v1384_v52  ;;  %v788_v61 = vmul.f32 %v2598_v40, %v2883_v47 }
 0x3ae   :  { %v2963_v31 = vpop.eup %2185  ;;  %v2969_v7 = vrot.slane %v2761_v58, %v2753_v20  ;;  %v874_v62 = vadd.f32 %v872_v38, %v870_v46  ;;  %2211 = vpow2.f32 %v1048_v35  ;;  %v2973_v16 = vrot.slane %v2750_v9, %v2744_v5 }
 0x3af   :  { %v2188_v15 = vpop.eup %2187  ;;  %v726_v29 = vmul.f32 0.0, %v2182_v17  ;;  %2213 = vpow2.f32 %v1430_v32  ;;  %v2978_v40 = vrot.slane %v2761_v58, %v2731_v59  ;;  %v2982_v47 = vrot.slane %v2750_v9, %v2753_v20  ;;  %v3321_v17 = vld [vmem:[#allocation10_spill] sm:$0xff] }
 0x3b0   :  { %3320 = vst [vmem:[#allocation29_spill] sm:$0xff] %v2973_v16  ;;  %v2190_v3 = vpop.eup %2189  ;;  %v1113_v14 = vmul.f32 0.0, %v2184_v23  ;;  %2215 = vpow2.f32 %v1432_v45  ;;  %v741_v5 = vsel %vm60_vm0, %v739_v49, 0.0  ;;  %v1302_v46 = vmul.f32 %v1301_v48, %v2827_v28  ;;  %v1008_v49 = vpop.permute.xlu0 %1007 }
 0x3b1   :  { %v2849_v2 = vpop.permute.xlu1 %955  ;;  %v2984_v52 = vpop.eup %2191  ;;  %v2992_v58 = vsel %vm60_vm0, %v788_v61, 0.0  ;;  %v918_v59 = vmul.f32 %v2951_v4, %v2777_v37  ;;  %v1350_v9 = vmul.f32 %v2946_v39, %v2833_v19  ;;  %v920_v20 = vmul.f32 %v2907_v8, %v874_v62 }
 0x3b2   :  { %v2989_v35 = vpop.eup %2193  ;;  %v1124_v28 = vmul.f32 %v2569_v21, %v2837_v10  ;;  %v1220_v32 = vmul.f32 %v2620_v54, %v2917_v30  ;;  %v3012_v19 = vmul.f32 %v2955_v60, %v2861_v57  ;;  %v1159_v8 = vmul.f32 %v2845_v42, %v2893_v22  ;;  %v3322_v21 = vld [vmem:[#allocation3_spill] sm:$0xff]  ;;  %v3324_v30 = vld [vmem:[#allocation4_spill] sm:$0xff] }
 0x3b3   :  { %v2999_v53 = vpop.eup %2195  ;;  %v836_v10 = vmul.f32 %v3322_v21, %v2913_v0  ;;  %v3023_v54 = vmul.f32 %v2927_v12, %v2923_v6  ;;  %v3029_v42 = vmul.f32 %v1301_v48, %v1296_v55  ;;  %v922_v22 = vadd.f32 %v920_v20, %v918_v59 }
 0x3b4   :  { %v3008_v37 = vpop.eup %2197  ;;  %v1126_v6 = vsel %vm60_vm0, %v1124_v28, 0.0 }
 0x3b5   :  { %v3019_v61 = vpop.eup %2199  ;;  %v3044_v48 = vsel %vm60_vm0, %v836_v10, 0.0  ;;  %v3326_v10 = vld [vmem:[#allocation12_spill] sm:$0xff] }
 0x3b6   :  { %v2879_v27 = vpop.permute.xlu1 %1003 }
 0x3bb   :  { %v2903_v36 = vpop.permute.xlu1 %1387 }
 0x3c0   :  { %v2935_v26 = vpop.permute.xlu1 %1435 }
 0x3c1   :  { %3319 = vst [vmem:[#allocation28_spill] sm:$0xff] %v2935_v26 }
 0x3c5   :  { %v717_v33 = vpop.permute.xlu1 %716 }
 0x3c6   :  { %v724_v50 = vmul.f32 %v2807_v18, %v717_v33  ;;  %v1304_v18 = vmul.f32 %v2172_v63, %v2961_v1  ;;  %v1172_v63 = vmul.f32 %v2576_v25, %v2877_v44  ;;  %v3323_v25 = vld [vmem:[#allocation27_spill] sm:$0xff]  ;;  %v884_v33 = vmul.f32 %v3324_v30, %v874_v62 }
 0x3c7   :  { %v3039_v62 = vsel %vm60_vm0, %v1220_v32, 0.0 }
 0x3c8   :  { %v728_v38 = vadd.f32 %v726_v29, %v724_v50  ;;  %v1306_v50 = vadd.f32 %v1304_v18, %v1302_v46  ;;  %v3027_v29 = vpop.eup %2201  ;;  %v1174_v12 = vsel %vm60_vm0, %v1172_v63, 0.0 }
 0x3c9   :  { %v3031_v21 = vpop.eup %2203 }
 0x3ca   :  { %v740_v45 = vmul.f32 %v3321_v17, %v728_v38  ;;  %v1104_v23 = vpop.permute.xlu1 %1103  ;;  %v3041_v46 = vpop.eup %2205  ;;  %v1352_v28 = vmul.f32 %v2921_v41, %v1306_v50  ;;  %v777_v32 = vmul.f32 %v2190_v3, %v728_v38  ;;  %v966_v38 = vmul.f32 %v2978_v40, %v2849_v2 }
 0x3cb   :  { %v1111_v44 = vmul.f32 %v3323_v25, %v1104_v23  ;;  %v3034_v23 = vmul.f32 %v2969_v7, %v1008_v49  ;;  %v3047_v20 = vpop.eup %2207  ;;  %v932_v25 = vmul.f32 %v3326_v10, %v922_v22  ;;  %v3330_v10 = vld [vmem:[#allocation11_spill] sm:$0xff] }
 0x3cc   :  { %v742_v57 = vsel %vm60_vm0, %v740_v45, 0.0  ;;  %v3050_v45 = vsel %vm60_vm0, %v884_v33, 0.0  ;;  %v3054_v49 = vpop.eup %2209 }
 0x3cd   :  { %v743_v17 = vadd.f32 %v742_v57, %v741_v5  ;;  %v1115_v0 = vadd.f32 %v1113_v14, %v1111_v44  ;;  %v3325_v5 = vld [vmem:[#allocation23_spill] sm:$0xff]  ;;  %v3058_v57 = vpop.eup %2211 }
 0x3ce   :  { %v3063_v26 = vpop.eup %2213 }
 0x3cf   :  { %v744_v55 = vrot.slane %v743_v17, 4  ;;  %v1125_v14 = vmul.f32 %v3325_v5, %v1115_v0  ;;  %v1161_v18 = vmul.f32 %v2188_v15, %v1115_v0  ;;  %v768_v59 = vpop.permute.xlu1 %767  ;;  %v3327_v0 = vld [vmem:[#allocation7_spill] sm:$0xff]  ;;  %v968_v5 = vmul.f32 %v2931_v43, %v922_v22 }
 0x3d0   :  { %v775_v63 = vmul.f32 %v2817_v56, %v768_v59  ;;  %v1268_v33 = vmul.f32 %v3327_v0, %v2961_v1  ;;  %v3328_v56 = vld [vmem:[#allocation8_spill] sm:$0xff] }
 0x3d1   :  { %v745_v44 = vadd.f32 %v744_v55, %v743_v17  ;;  %v1127_v30 = vsel %vm60_vm0, %v1125_v14, 0.0  ;;  %v1163_v15 = vadd.f32 %v1161_v18, %v1159_v8  ;;  %v1316_v3 = vmul.f32 %v3328_v56, %v1306_v50  ;;  %v3329_v55 = vld [vmem:[#allocation20_spill] sm:$0xff]  ;;  %v3069_v8 = vpop.eup %2215 }
 0x3d2   :  { %v1128_v41 = vadd.f32 %v1127_v30, %v1126_v6  ;;  %v779_v16 = vadd.f32 %v777_v32, %v775_v63  ;;  %v1354_v18 = vadd.f32 %v1352_v28, %v1350_v9  ;;  %v3076_v63 = vsel %vm60_vm0, %v932_v25, 0.0 }
 0x3d3   :  { %v746_v17 = vrot.slane %v745_v44, 2  ;;  %v1173_v14 = vmul.f32 %v3329_v55, %v1163_v15  ;;  %v3079_v2 = vsel %vm60_vm0, %v1268_v33, 0.0  ;;  %v3083_v30 = vsel %vm60_vm0, %v1316_v3, 0.0  ;;  %v3332_v33 = vld [vmem:[#allocation19_spill] sm:$0xff] }
 0x3d4   :  { %v1129_v59 = vrot.slane %v1128_v41, 4  ;;  %v789_v1 = vmul.f32 %v3330_v10, %v779_v16  ;;  %v816_v0 = vpop.permute.xlu1 %815  ;;  %v825_v43 = vmul.f32 %v2984_v52, %v779_v16 }
 0x3d5   :  { %v747_v22 = vadd.f32 %v746_v17, %v745_v44  ;;  %v823_v6 = vmul.f32 %v2873_v13, %v816_v0  ;;  %v1175_v50 = vsel %vm60_vm0, %v1173_v14, 0.0  ;;  %v970_v13 = vadd.f32 %v968_v5, %v966_v38  ;;  %v3331_v44 = vld [vmem:[#allocation17_spill] sm:$0xff] }
 0x3d6   :  { %v1130_v32 = vadd.f32 %v1129_v59, %v1128_v41  ;;  %v791_v9 = vsel %vm60_vm0, %v789_v1, 0.0  ;;  %v1176_v28 = vadd.f32 %v1175_v50, %v1174_v12  ;;  %v1364_v17 = vmul.f32 %v3331_v44, %v1354_v18 }
 0x3d7   :  { %v748_v56 = vrot.slane %v747_v22, 1  ;;  %v792_v16 = vadd.f32 %v791_v9, %v2992_v58  ;;  %v827_v52 = vadd.f32 %v825_v43, %v823_v6  ;;  %v1209_v50 = vmul.f32 %v2999_v53, %v1163_v15 }
 0x3d8   :  { %v1131_v55 = vrot.slane %v1130_v32, 2  ;;  %v1177_v25 = vrot.slane %v1176_v28, 4  ;;  %v3092_v58 = vmul.f32 %v2963_v31, %v1354_v18  ;;  %v1016_v53 = vmul.f32 %v2937_v51, %v970_v13  ;;  %v3333_v31 = vld [vmem:[#allocation13_spill] sm:$0xff] }
 0x3d9   :  { %v749_v14 = vadd.f32 %v748_v56, %v747_v22  ;;  %v793_v10 = vrot.slane %v792_v16, 4  ;;  %v837_v0 = vmul.f32 %v3332_v33, %v827_v52  ;;  %v873_v41 = vmul.f32 %v2989_v35, %v827_v52  ;;  %v1200_v59 = vpop.permute.xlu1 %1199 }
 0x3da   :  { %v1132_v12 = vadd.f32 %v1131_v55, %v1130_v32  ;;  %v1178_v1 = vadd.f32 %v1177_v25, %v1176_v28  ;;  %v1207_v3 = vmul.f32 %v2867_v11, %v1200_v59  ;;  %v1014_v11 = vmul.f32 %v2969_v7, %v2879_v27 }
 0x3db   :  { %751 = vst.msk [vmem:[#allocation2] sm:$0x1] %vm750_vm1, %v749_v14  ;;  %v794_v5 = vadd.f32 %v793_v10, %v792_v16  ;;  %v839_v38 = vsel %vm60_vm0, %v837_v0, 0.0  ;;  %v875_v43 = vadd.f32 %v873_v41, %v3023_v54  ;;  %v3334_v16 = vld [vmem:[#allocation22_spill] sm:$0xff]  ;;  %v3335_v10 = vld [vmem:[#allocation5_spill] sm:$0xff] }
 0x3dc   :  { %v1133_v22 = vrot.slane %v1132_v12, 1  ;;  %v840_v35 = vadd.f32 %v839_v38, %v3044_v48  ;;  %v1179_v6 = vrot.slane %v1178_v1, 2  ;;  %v1211_v32 = vadd.f32 %v1209_v50, %v1207_v3 }
 0x3dd   :  { %v795_v15 = vrot.slane %v794_v5, 2  ;;  %v885_v18 = vmul.f32 %v3333_v31, %v875_v43  ;;  %v980_v33 = vmul.f32 %v3335_v10, %v970_v13 }
 0x3de   :  { %v1134_v9 = vadd.f32 %v1133_v22, %v1132_v12  ;;  %v841_v28 = vrot.slane %v840_v35, 4  ;;  %v1180_v56 = vadd.f32 %v1179_v6, %v1178_v1  ;;  %v1221_v52 = vmul.f32 %v3334_v16, %v1211_v32  ;;  %v1248_v44 = vpop.permute.xlu1 %1247 }
 0x3df   :  { %v796_v54 = vadd.f32 %v795_v15, %v794_v5  ;;  %v1255_v55 = vmul.f32 %v2889_v24, %v1248_v44  ;;  %v1257_v48 = vmul.f32 %v3008_v37, %v1211_v32  ;;  %v887_v25 = vsel %vm60_vm0, %v885_v18, 0.0  ;;  %v3336_v5 = vld [vmem:[#allocation26_spill] sm:$0xff] }
 0x3e0   :  { %1135 = vst.msk [vmem:[#allocation2 + $0x8] sm:$0x1] %vm750_vm1, %v1134_v9  ;;  %v842_v27 = vadd.f32 %v841_v28, %v840_v35  ;;  %v1181_v51 = vrot.slane %v1180_v56, 1  ;;  %v1223_v7 = vsel %vm60_vm0, %v1221_v52, 0.0  ;;  %v888_v14 = vadd.f32 %v887_v25, %v3050_v45 }
 0x3e1   :  { %v797_v0 = vrot.slane %v796_v54, 1  ;;  %v1224_v41 = vadd.f32 %v1223_v7, %v3039_v62  ;;  %v1259_v59 = vadd.f32 %v1257_v48, %v1255_v55  ;;  %v1018_v12 = vadd.f32 %v1016_v53, %v1014_v11  ;;  %v3339_v55 = vld [vmem:[#allocation15_spill] sm:$0xff] }
 0x3e2   :  { %v843_v24 = vrot.slane %v842_v27, 2  ;;  %v1182_v1 = vadd.f32 %v1181_v51, %v1180_v56  ;;  %v889_v37 = vrot.slane %v888_v14, 4  ;;  %v921_v62 = vmul.f32 %v3027_v29, %v875_v43  ;;  %v3338_v43 = vld [vmem:[#allocation24_spill] sm:$0xff] }
 0x3e3   :  { %v798_v3 = vadd.f32 %v797_v0, %v796_v54  ;;  %v1225_v50 = vrot.slane %v1224_v41, 4  ;;  %v1269_v38 = vmul.f32 %v3336_v5, %v1259_v59  ;;  %v1305_v22 = vmul.f32 %v3019_v61, %v1259_v59  ;;  %v912_v35 = vpop.permute.xlu1 %911 }
 0x3e4   :  { %v844_v6 = vadd.f32 %v843_v24, %v842_v27  ;;  %1183 = vst.msk [vmem:[#allocation2 + $0x9] sm:$0x1] %vm750_vm1, %v1182_v1  ;;  %v890_v45 = vadd.f32 %v889_v37, %v888_v14  ;;  %v919_v13 = vmul.f32 %v2951_v4, %v912_v35  ;;  %v3120_v15 = vsel %vm60_vm0, %v1364_v17, 0.0  ;;  %v3337_v4 = vld [vmem:[#allocation6_spill] sm:$0xff] }
 0x3e5   :  { %799 = vst.msk [vmem:[#allocation2 + $0x1] sm:$0x1] %vm750_vm1, %v798_v3  ;;  %v1226_v32 = vadd.f32 %v1225_v50, %v1224_v41  ;;  %v1271_v11 = vsel %vm60_vm0, %v1269_v38, 0.0  ;;  %v1307_v53 = vadd.f32 %v1305_v22, %v3029_v42  ;;  %v982_v28 = vsel %vm60_vm0, %v980_v33, 0.0  ;;  %v3340_v50 = vld [vmem:[#allocation21_spill] sm:$0xff] }
 0x3e6   :  { %v845_v61 = vrot.slane %v844_v6, 1  ;;  %v1272_v31 = vadd.f32 %v1271_v11, %v3079_v2  ;;  %v891_v18 = vrot.slane %v890_v45, 2  ;;  %v923_v9 = vadd.f32 %v921_v62, %v919_v13  ;;  %v1440_v13 = vpop.permute.xlu0 %1439 }
 0x3e7   :  { %v1028_v56 = vmul.f32 %v3337_v4, %v1018_v12  ;;  %v1227_v29 = vrot.slane %v1226_v32, 2  ;;  %v1317_v16 = vmul.f32 %v3338_v43, %v1307_v53  ;;  %v1064_v33 = vmul.f32 %v2942_v34, %v1018_v12 }
 0x3e8   :  { %v846_v52 = vadd.f32 %v845_v61, %v844_v6  ;;  %v1273_v44 = vrot.slane %v1272_v31, 4  ;;  %v892_v54 = vadd.f32 %v891_v18, %v890_v45  ;;  %v933_v42 = vmul.f32 %v3339_v55, %v923_v9  ;;  %v960_v48 = vpop.permute.xlu1 %959  ;;  %v3343_v55 = vld [vmem:[#allocation9_spill] sm:$0xff] }
 0x3e9   :  { %v1228_v17 = vadd.f32 %v1227_v29, %v1226_v32  ;;  %v967_v25 = vmul.f32 %v2978_v40, %v960_v48  ;;  %v969_v2 = vmul.f32 %v3031_v21, %v923_v9  ;;  %v1319_v27 = vsel %vm60_vm0, %v1317_v16, 0.0 }
 0x3ea   :  { %847 = vst.msk [vmem:[#allocation2 + $0x2] sm:$0x1] %vm750_vm1, %v846_v52  ;;  %v1274_v51 = vadd.f32 %v1273_v44, %v1272_v31  ;;  %v893_v7 = vrot.slane %v892_v54, 1  ;;  %v935_v14 = vsel %vm60_vm0, %v933_v42, 0.0  ;;  %v1320_v10 = vadd.f32 %v1319_v27, %v3083_v30  ;;  %v3344_v27 = vld [vmem:[#allocation14_spill] sm:$0xff] }
 0x3eb   :  { %v1229_v0 = vrot.slane %v1228_v17, 1  ;;  %v936_v41 = vadd.f32 %v935_v14, %v3076_v63  ;;  %v971_v59 = vadd.f32 %v969_v2, %v967_v25  ;;  %v1398_v40 = vmul.f32 %v2982_v47, %v2903_v36  ;;  %v1410_v2 = vpop.permute.xlu0 %1409 }
 0x3ec   :  { %v1275_v21 = vrot.slane %v1274_v51, 2  ;;  %v894_v24 = vadd.f32 %v893_v7, %v892_v54  ;;  %v1321_v1 = vrot.slane %v1320_v10, 4  ;;  %v1353_v12 = vmul.f32 %v3047_v20, %v1307_v53  ;;  %v3341_v20 = vld [vmem:[#allocation16_spill] sm:$0xff] }
 0x3ed   :  { %v1230_v37 = vadd.f32 %v1229_v0, %v1228_v17  ;;  %v937_v3 = vrot.slane %v936_v41, 4  ;;  %v981_v5 = vmul.f32 %v3340_v50, %v971_v59  ;;  %v1017_v38 = vmul.f32 %v3041_v46, %v971_v59  ;;  %v1344_v22 = vpop.permute.xlu1 %1343 }
 0x3ee   :  { %v1276_v30 = vadd.f32 %v1275_v21, %v1274_v51  ;;  %895 = vst.msk [vmem:[#allocation2 + $0x3] sm:$0x1] %vm750_vm1, %v894_v24  ;;  %v1322_v34 = vadd.f32 %v1321_v1, %v1320_v10  ;;  %v1351_v63 = vmul.f32 %v2946_v39, %v1344_v22  ;;  %v1030_v36 = vsel %vm60_vm0, %v1028_v56, 0.0  ;;  %v3342_v56 = vld [vmem:[#allocation25_spill] sm:$0xff]  ;;  %v3345_v1 = vld [vmem:[#allocation28_spill] sm:$0xff] }
 0x3ef   :  { %1231 = vst.msk [vmem:[#allocation2 + $0xa] sm:$0x1] %vm750_vm1, %v1230_v37  ;;  %v938_v35 = vadd.f32 %v937_v3, %v936_v41  ;;  %v983_v6 = vsel %vm60_vm0, %v981_v5, 0.0  ;;  %v1019_v45 = vadd.f32 %v1017_v38, %v3034_v23  ;;  %v1066_v61 = vadd.f32 %v1064_v33, %v3012_v19  ;;  %v3346_v37 = vld [vmem:[#allocation29_spill] sm:$0xff] }
 0x3f0   :  { %v1277_v46 = vrot.slane %v1276_v30, 1  ;;  %v984_v62 = vadd.f32 %v983_v6, %v982_v28  ;;  %v1323_v32 = vrot.slane %v1322_v34, 2  ;;  %v1355_v11 = vadd.f32 %v1353_v12, %v1351_v63 }
 0x3f1   :  { %v1402_v39 = vadd.f32 %v3092_v58, %v1398_v40  ;;  %v939_v31 = vrot.slane %v938_v35, 2  ;;  %v1029_v53 = vmul.f32 %v3341_v20, %v1019_v45  ;;  %v1446_v3 = vmul.f32 %v3346_v37, %v3345_v1 }
 0x3f2   :  { %v1278_v18 = vadd.f32 %v1277_v46, %v1276_v30  ;;  %v985_v9 = vrot.slane %v984_v62, 4  ;;  %v1324_v4 = vadd.f32 %v1323_v32, %v1322_v34  ;;  %v1365_v29 = vmul.f32 %v3342_v56, %v1355_v11  ;;  %v1392_v43 = vpop.permute.xlu1 %1391 }
 0x3f3   :  { %v940_v16 = vadd.f32 %v939_v31, %v938_v35  ;;  %v1399_v23 = vmul.f32 %v2982_v47, %v1392_v43  ;;  %v1401_v28 = vmul.f32 %v3054_v49, %v1355_v11  ;;  %v1031_v52 = vsel %vm60_vm0, %v1029_v53, 0.0 }
 0x3f4   :  { %1279 = vst.msk [vmem:[#allocation2 + $0xb] sm:$0x1] %vm750_vm1, %v1278_v18  ;;  %v986_v19 = vadd.f32 %v985_v9, %v984_v62  ;;  %v1325_v58 = vrot.slane %v1324_v4, 1  ;;  %v1367_v44 = vsel %vm60_vm0, %v1365_v29, 0.0  ;;  %v1032_v54 = vadd.f32 %v1031_v52, %v1030_v36  ;;  %v3347_v36 = vld [vmem:[#allocation18_spill] sm:$0xff] }
 0x3f5   :  { %v1412_v42 = vmul.f32 %v3343_v55, %v1402_v39  ;;  %v941_v48 = vrot.slane %v940_v16, 1  ;;  %v1368_v17 = vadd.f32 %v1367_v44, %v3120_v15  ;;  %v1403_v25 = vadd.f32 %v1401_v28, %v1399_v23 }
 0x3f6   :  { %v1076_v47 = vmul.f32 %v3344_v27, %v1066_v61  ;;  %v987_v51 = vrot.slane %v986_v19, 2  ;;  %v1326_v49 = vadd.f32 %v1325_v58, %v1324_v4  ;;  %v1033_v7 = vrot.slane %v1032_v54, 4 }
 0x3f7   :  { %v942_v14 = vadd.f32 %v941_v48, %v940_v16  ;;  %v1369_v10 = vrot.slane %v1368_v17, 4  ;;  %v1413_v33 = vmul.f32 %v1410_v2, %v1403_v25  ;;  %v1056_v0 = vpop.permute.xlu1 %1055  ;;  %v1448_v41 = vmul.f32 %v3063_v26, %v1402_v39 }
 0x3f8   :  { %v988_v59 = vadd.f32 %v987_v51, %v986_v19  ;;  %1327 = vst.msk [vmem:[#allocation2 + $0xc] sm:$0x1] %vm750_vm1, %v1326_v49  ;;  %v1034_v40 = vadd.f32 %v1033_v7, %v1032_v54  ;;  %v1063_v21 = vmul.f32 %v2955_v60, %v1056_v0  ;;  %v1065_v15 = vmul.f32 %v3058_v57, %v1019_v45  ;;  %v2230_v0 = vld [vmem:[%s3292_s26] sm:$0xff] }
 0x3f9   :  { %v1414_v24 = vsel %vm60_vm0, %v1412_v42, 0.0  ;;  %943 = vst.msk [vmem:[#allocation2 + $0x4] sm:$0x1] %vm750_vm1, %v942_v14  ;;  %v1370_v50 = vadd.f32 %v1369_v10, %v1368_v17  ;;  %v1415_v5 = vsel %vm60_vm0, %v1413_v33, 0.0  ;;  %v1449_v63 = vmul.f32 %v3069_v8, %v1403_v25  ;;  %v2229_v14 = vld [vmem:[%s3292_s26 + $0x8] sm:$0xff] }
 0x3fa   :  { %v989_v38 = vrot.slane %v988_v59, 1  ;;  %v1416_v26 = vadd.f32 %v1415_v5, %v1414_v24  ;;  %v1035_v22 = vrot.slane %v1034_v40, 2  ;;  %v1067_v30 = vadd.f32 %v1065_v15, %v1063_v21 }
 0x3fb   :  { %v1371_v34 = vrot.slane %v1370_v50, 2  ;;  %v1447_v45 = vmul.f32 %v3346_v37, %v1440_v13  ;;  %v1450_v62 = vadd.f32 %v1448_v41, %v1446_v3  ;;  %v1078_v61 = vsel %vm60_vm0, %v1076_v47, 0.0 }
 0x3fc   :  { %v990_v60 = vadd.f32 %v989_v38, %v988_v59  ;;  %v1417_v12 = vrot.slane %v1416_v26, 4  ;;  %v1036_v57 = vadd.f32 %v1035_v22, %v1034_v40  ;;  %v1077_v35 = vmul.f32 %v3347_v36, %v1067_v30  ;;  %v1454_v6 = vpop.permute.xlu1 %1453  ;;  %v1608_v22 = vld [vmem:[%s3280_s14 + $0x18] sm:$0xff]  ;;  %v1704_v36 = vld [vmem:[%s3281_s15] sm:$0xff] }
 0x3fd   :  { %v1372_v46 = vadd.f32 %v1371_v34, %v1370_v50  ;;  %v1460_v20 = vmul.f32 %v1454_v6, %v1450_v62  ;;  %v1451_v53 = vadd.f32 %v1449_v63, %v1447_v45  ;;  %v1707_v30 = vld [vmem:[%s3281_s15 + $0x18] sm:$0xff]  ;;  %v1607_v34 = vld [vmem:[%s3280_s14 + $0x10] sm:$0xff]  ;;  %2007 = vmatprep.subr.mxu0 %v1608_v22 }
 0x3fe   :  { %991 = vst.msk [vmem:[#allocation2 + $0x5] sm:$0x1] %vm750_vm1, %v990_v60  ;;  %v1418_v32 = vadd.f32 %v1417_v12, %v1416_v26  ;;  %v1037_v11 = vrot.slane %v1036_v57, 1  ;;  %v1079_v39 = vsel %vm60_vm0, %v1077_v35, 0.0  ;;  %2018 = vmatprep.subr.mxu1 %v1707_v30  ;;  %v1706_v63 = vld [vmem:[%s3281_s15 + $0x10] sm:$0xff]  ;;  %2008 = vmatpush3.msra.mxu0 %v1608_v22  ;;  %v1606_v60 = vld [vmem:[%s3280_s14 + $0x8] sm:$0xff] }
 0x3ff   :  { %v1373_v31 = vrot.slane %v1372_v46, 1  ;;  %v1080_v8 = vadd.f32 %v1079_v39, %v1078_v61  ;;  %v1462_v23 = vsel %vm60_vm0, %v1460_v20, 0.0  ;;  %2009 = vmatprep.subr.mxu0 %v1607_v34  ;;  %v1705_v12 = vld [vmem:[%s3281_s15 + $0x8] sm:$0xff]  ;;  %v1899_v61 = vld [vmem:[%s3282_s12] ss:$0 sm:$0xff] }
 0x400   :  { %v1419_v18 = vrot.slane %v1418_v32, 2  ;;  %v1038_v9 = vadd.f32 %v1037_v11, %v1036_v57  ;;  %v1458_v4 = vpop.permute.xlu1 %1457  ;;  %2010 = vmatpush3.msra.mxu0 %v1607_v34  ;;  %v1605_v57 = vld [vmem:[%s3280_s14] sm:$0xff] }
 0x401   :  { %v1374_v56 = vadd.f32 %v1373_v31, %v1372_v46  ;;  %v1081_v29 = vrot.slane %v1080_v8, 4  ;;  %v1461_v13 = vmul.f32 %v1458_v4, %v1451_v53  ;;  %2011 = vmatprep.subr.mxu0 %v1606_v60  ;;  %v1900_v31 = vld [vmem:[%s3283_s13] ss:$0 sm:$0xff] }
 0x402   :  { %v1420_v43 = vadd.f32 %v1419_v18, %v1418_v32  ;;  %1039 = vst.msk [vmem:[#allocation2 + $0x6] sm:$0x1] %vm750_vm1, %v1038_v9  ;;  %2012 = vmatpush3.msra.mxu0 %v1606_v60 }
 0x403   :  { %1375 = vst.msk [vmem:[#allocation2 + $0xd] sm:$0x1] %vm750_vm1, %v1374_v56  ;;  %v1082_v16 = vadd.f32 %v1081_v29, %v1080_v8  ;;  %v1463_v28 = vsel %vm60_vm0, %v1461_v13, 0.0  ;;  %2013 = vmatprep.subr.mxu0 %v1605_v57  ;;  %v1792_v56 = vld [vmem:[%s3284_s16 + $0x38] sm:$0xff]  ;;  %v1791_v29 = vld [vmem:[%s3284_s16 + $0x30] sm:$0xff]  ;;  %v1790_v13 = vld [vmem:[%s3284_s16 + $0x28] sm:$0xff] }
 0x404   :  { %v1421_v52 = vrot.slane %v1420_v43, 1  ;;  %v1464_v19 = vadd.f32 %v1463_v28, %v1462_v23  ;;  %2014 = vmatpush3.msra.mxu0 %v1605_v57  ;;  %v1787_v23 = vld [vmem:[%s3284_s16 + $0x10] sm:$0xff]  ;;  %v1786_v28 = vld [vmem:[%s3284_s16 + $0x8] sm:$0xff] }
 0x405   :  { %v1083_v58 = vrot.slane %v1082_v16, 2  ;;  %2029 = vmatprep.subr.mxu0 %v1792_v56 }
 0x406   :  { %v1422_v44 = vadd.f32 %v1421_v52, %v1420_v43  ;;  %v1465_v54 = vrot.slane %v1464_v19, 4  ;;  %v1789_v43 = vld [vmem:[%s3284_s16 + $0x20] sm:$0xff] }
 0x407   :  { %v1084_v55 = vadd.f32 %v1083_v58, %v1082_v16  ;;  %v1788_v16 = vld [vmem:[%s3284_s16 + $0x18] sm:$0xff]  ;;  %v1785_v52 = vld [vmem:[%s3284_s16] sm:$0xff] }
 0x408   :  { %1423 = vst.msk [vmem:[#allocation2 + $0xe] sm:$0x1] %vm750_vm1, %v1422_v44  ;;  %v1466_v42 = vadd.f32 %v1465_v54, %v1464_v19 }
 0x409   :  { %v1085_v48 = vrot.slane %v1084_v55, 1 }
 0x40a   :  { %v1467_v17 = vrot.slane %v1466_v42, 2 }
 0x40b   :  { %v1086_v25 = vadd.f32 %v1085_v48, %v1084_v55 }
 0x40c   :  { %v1468_v2 = vadd.f32 %v1467_v17, %v1466_v42 }
 0x40d   :  { %1087 = vst.msk [vmem:[#allocation2 + $0x7] sm:$0x1] %vm750_vm1, %v1086_v25 }
 0x40e   :  { %v1469_v27 = vrot.slane %v1468_v2, 1 }
 0x410   :  { %v1470_v47 = vadd.f32 %v1469_v27, %v1468_v2 }
 0x412   :  { %1471 = vst.msk [vmem:[#allocation2 + $0xf] sm:$0x1] %vm750_vm1, %v1470_v47 }
 0x414   :  { %v1472_v51 = vld [vmem:[#allocation2] sm:$0xff] }
 0x415   :  { %2004 = vmatprep.mubr.msk.f32.mxu1 %vm60_vm0, %v1472_v51 }
 0x419   :  { %v1473_v49 = vld [vmem:[#allocation2 + $0x8] sm:$0xff] }
 0x41a   :  { %2005 = vmatmul.mubr.msk.f32.vlgmr.msra.gmra.mxu1 %vm60_vm0, %v1473_v49 }
 0x41b   :  { %2019 = vmatpush3.msra.mxu1 %v1707_v30 }
 0x41c   :  { %2020 = vmatprep.subr.mxu1 %v1706_v63 }
 0x41d   :  { %2021 = vmatpush3.msra.mxu1 %v1706_v63 }
 0x41e   :  { %2022 = vmatprep.subr.mxu1 %v1705_v12 }
 0x41f   :  { %2023 = vmatpush3.msra.mxu1 %v1705_v12 }
 0x420   :  { %2024 = vmatprep.subr.mxu1 %v1704_v36 }
 0x421   :  { %2025 = vmatpush3.msra.mxu1 %v1704_v36 }
 0x4da   :  { %v2006_v7 = vpop.f32.mrf.mxu1 }
 0x4db   :  { %v3185_v10 = vadd.f32 %v2229_v14, %v2006_v7 }
 0x4dc   :  { %v1550_v33 = vpop.f32.mrf.mxu1 }
 0x4dd   :  { %v3190_v41 = vadd.f32 %v2230_v0, %v1550_v33  ;;  %v1566_v59 = vsel %vm60_vm0, %v3185_v10, 0.0 }
 0x4de   :  { %1567 = vadd.xlane.f32.xlu1 %v1566_v59 }
 0x4df   :  { %v1563_v40 = vsel %vm60_vm0, %v3190_v41, 0.0 }
 0x4e0   :  { %1564 = vadd.xlane.f32.xlu0 %v1563_v40 }
 0x567   :  { %v1568_v21 = vpop.xlane.xlu1 %1567 }
 0x568   :  { %v1570_v15 = vmul.f32 0.03125, %v1568_v21 }
 0x569   :  { %v1565_v24 = vpop.xlane.xlu0 %1564 }
 0x56a   :  { %v1569_v1 = vmul.f32 0.03125, %v1565_v24  ;;  %v1572_v37 = vsub.f32 %v3185_v10, %v1570_v15 }
 0x56c   :  { %v1571_v3 = vsub.f32 %v3190_v41, %v1569_v1  ;;  %v1574_v38 = vmul.f32 %v1572_v37, %v1572_v37 }
 0x56e   :  { %v1573_v50 = vmul.f32 %v1571_v3, %v1571_v3  ;;  %v1578_v26 = vsel %vm60_vm0, %v1574_v38, 0.0 }
 0x570   :  { %v1575_v5 = vsel %vm60_vm0, %v1573_v50, 0.0 }
 0x571   :  { %1576 = vadd.xlane.f32.xlu0 %v1575_v5 }
 0x575   :  { %1579 = vadd.xlane.f32.xlu0 %v1578_v26 }
 0x5fa   :  { %v1577_v35 = vpop.xlane.xlu0 %1576 }
 0x5fb   :  { %v1581_v6 = vmul.f32 0.03125, %v1577_v35 }
 0x5fd   :  { %v1583_v45 = vadd.f32 1e-05, %v1581_v6 }
 0x5fe   :  { %v1580_v46 = vpop.xlane.xlu0 %1579 }
 0x5ff   :  { %2217 = vrsqrt.f32 %v1583_v45  ;;  %v1582_v62 = vmul.f32 0.03125, %v1580_v46 }
 0x601   :  { %v1584_v32 = vadd.f32 1e-05, %v1582_v62 }
 0x603   :  { %2219 = vrsqrt.f32 %v1584_v32 }
 0x60c   :  { %v2218_v11 = vpop.eup %2217 }
 0x60d   :  { %v1587_v39 = vmul.f32 %v2218_v11, %v1571_v3 }
 0x60f   :  { %v1595_v8 = vmul.f32 %v1899_v61, %v1587_v39 }
 0x610   :  { %v2220_v20 = vpop.eup %2219 }
 0x611   :  { %v1588_v53 = vmul.f32 %v2220_v20, %v1572_v37  ;;  %v1603_v18 = vadd.f32 %v1900_v31, %v1595_v8 }
 0x613   :  { %v1596_v9 = vmul.f32 %v1899_v61, %v1588_v53  ;;  %2015 = vmatprep.mubr.msk.f32.mxu0 %vm60_vm0, %v1603_v18  ;;  %2026 = vmatprep.mubr.msk.f32.mxu1 %vm60_vm0, %v1603_v18 }
 0x615   :  { %v1604_v4 = vadd.f32 %v1900_v31, %v1596_v9 }
 0x617   :  { %2016 = vmatmul.mubr.msk.f32.vlgmr.msra.gmra.mxu0 %vm60_vm0, %v1604_v4  ;;  %2027 = vmatmul.mubr.msk.f32.vlgmr.msra.gmra.mxu1 %vm60_vm0, %v1604_v4 }
 0x618   :  { %2030 = vmatpush3.msra.mxu0 %v1792_v56 }
 0x619   :  { %2031 = vmatprep.subr.mxu0 %v1791_v29 }
 0x61a   :  { %2032 = vmatpush3.msra.mxu0 %v1791_v29 }
 0x61b   :  { %2033 = vmatprep.subr.mxu0 %v1790_v13 }
 0x61c   :  { %2034 = vmatpush3.msra.mxu0 %v1790_v13 }
 0x61d   :  { %2035 = vmatprep.subr.mxu0 %v1789_v43 }
 0x61e   :  { %2036 = vmatpush3.msra.mxu0 %v1789_v43 }
 0x61f   :  { %2037 = vmatprep.subr.mxu0 %v1788_v16 }
 0x620   :  { %2038 = vmatpush3.msra.mxu0 %v1788_v16 }
 0x621   :  { %2039 = vmatprep.subr.mxu0 %v1787_v23 }
 0x622   :  { %2040 = vmatpush3.msra.mxu0 %v1787_v23 }
 0x623   :  { %2041 = vmatprep.subr.mxu0 %v1786_v28 }
 0x624   :  { %2042 = vmatpush3.msra.mxu0 %v1786_v28 }
 0x625   :  { %2043 = vmatprep.subr.mxu0 %v1785_v52 }
 0x626   :  { %2044 = vmatpush3.msra.mxu0 %v1785_v52 }
 0x6d7   :  { %v2017_v19 = vpop.f32.mrf.mxu0  ;;  %v2028_v2 = vpop.f32.mrf.mxu1 }
 0x6d8   :  { %v1904_v58 = vmul.f32 -1.442695, %v2017_v19 }
 0x6d9   :  { %v1681_v44 = vpop.f32.mrf.mxu0  ;;  %v1774_v49 = vpop.f32.mrf.mxu1 }
 0x6da   :  { %2221 = vpow2.f32 %v1904_v58  ;;  %v1903_v54 = vmul.f32 -1.442695, %v1681_v44 }
 0x6dc   :  { %2223 = vpow2.f32 %v1903_v54 }
 0x6e7   :  { %v2222_v55 = vpop.eup %2221 }
 0x6e8   :  { %v1697_v42 = vadd.f32 1.0, %v2222_v55 }
 0x6e9   :  { %v2224_v48 = vpop.eup %2223 }
 0x6ea   :  { %2225 = vrcp.f32 %v1697_v42  ;;  %v1696_v17 = vadd.f32 1.0, %v2224_v48 }
 0x6ec   :  { %2227 = vrcp.f32 %v1696_v17 }
 0x6f7   :  { %v2226_v25 = vpop.eup %2225 }
 0x6f8   :  { %v1703_v47 = vmul.f32 %v2226_v25, %v2017_v19 }
 0x6f9   :  { %v2228_v27 = vpop.eup %2227 }
 0x6fa   :  { %v1702_v51 = vmul.f32 %v2228_v27, %v1681_v44  ;;  %v1784_v14 = vmul.f32 %v2028_v2, %v1703_v47 }
 0x6fc   :  { %v1783_v7 = vmul.f32 %v1774_v49, %v1702_v51 }
 0x6fe   :  { %2045 = vmatprep.mubr.msk.f32.mxu0 %vm1793_vm2, %v1783_v7 }
 0x6ff   :  { %2046 = vmatmul.mubr.msk.f32.vlgmr.msra.gmra.mxu0 %vm1793_vm2, %v1784_v14 }
 0x7bf   :  { %v2047_v33 = vpop.f32.mrf.mxu0 }
 0x7c0   :  { %v1876_v0 = vadd.f32 %v2047_v33, %v3185_v10 }
 0x7c1   :  { %v1866_v59 = vpop.f32.mrf.mxu0 }
 0x7c2   :  { %1878 = vst.msk [vmem:[%s3285_s17 + $0x8] sm:$0xff] %vm60_vm0, %v1876_v0  ;;  %v1875_v40 = vadd.f32 %v1866_v59, %v3190_v41 }
 0x7c4   :  { %1877 = vst.msk [vmem:[%s3285_s17] sm:$0xff] %vm60_vm0, %v1875_v40 }

</bundles_post_ra>
